<compile_context>
chip_gen: v6e
topology: v6e:2x2x1
jax: 0.10.0
libtpu: 0.0.40
codegen_flags: <defaults>
</compile_context>

<pallas_src>
import jax
import jax.numpy as jnp
from jax.experimental import pallas as pl
from jax.experimental.pallas import tpu as pltpu

BATCH = 64
IN_SIZE = 28 * 28        # 784 = 49*16 -> already bf16-sublane aligned, no K padding
HIDDEN = 300
OUT_SIZE = 10

HIDDEN_PAD = 384         # 3 * 128 (lane-aligned hidden width)
OUT_PAD = 128            # 1 * 128 (lane-aligned logit width, kernel-internal only)

NEG_BIG = -1e30          # Python float (baked into b2 padding; no captured jnp constant)


def mlp_kernel(x_ref, w1_ref, b1_ref, w2_ref, b2_ref, o_ref):
    # x_ref : (BATCH, IN_SIZE)       f32   (cast to bf16 in-kernel)
    # w1_ref: (IN_SIZE, HIDDEN_PAD)  bf16  (padded hidden cols are zero)
    # b1_ref: (1, HIDDEN_PAD)        f32   (padded cols zero -> tanh(0+0)=0 keeps them inert)
    # w2_ref: (HIDDEN_PAD, OUT_PAD)  bf16  (padded rows/cols are zero)
    # b2_ref: (1, OUT_PAD)           f32   (cols >= OUT_SIZE hold -1e30 -> softmax mask baked in)
    # o_ref : (BATCH, OUT_SIZE)      f32

    x = x_ref[...].astype(jnp.bfloat16)

    # fc1 + tanh  (MXU matmul with f32 accumulation; tanh on the EUP).
    h = jnp.dot(x, w1_ref[...], preferred_element_type=jnp.float32)
    h = jnp.tanh(h + b1_ref[...])

    # fc2. Padded hidden rows of w2 are zero (exact); padded logit lanes pick up
    # the -1e30 baked into b2, which masks them out of the softmax reductions.
    z = jnp.dot(h.astype(jnp.bfloat16), w2_ref[...],
                preferred_element_type=jnp.float32) + b2_ref[...]

    # Numerically-stable log_softmax over dim=1 (XLU reductions + EUP exp/log).
    m = jnp.max(z, axis=-1, keepdims=True)
    shifted = z - m
    lse = jnp.log(jnp.sum(jnp.exp(shifted), axis=-1, keepdims=True))
    out = shifted - lse

    # Store only the 10 real logit columns (tiny masked store; avoids a wrapper slice op).
    o_ref[...] = out[:, :OUT_SIZE].astype(o_ref.dtype)


def pad_params(w1, b1, w2, b2):
    """One-time layout plumbing: lane-pad hidden/logit dims, cast weights to bf16.

    Weights are stored pre-transposed as (in, out) so the kernel computes
    y = x @ W + b (equivalent to PyTorch's x @ W.T + b).  b2's padded lanes are
    filled with -1e30 so the kernel needs no explicit softmax mask.
    """
    w1_p = jnp.pad(w1.astype(jnp.bfloat16), ((0, 0), (0, HIDDEN_PAD - HIDDEN)))
    b1_p = jnp.pad(b1.astype(jnp.float32), ((0, 0), (0, HIDDEN_PAD - HIDDEN)))
    w2_p = jnp.pad(w2.astype(jnp.bfloat16),
                   ((0, HIDDEN_PAD - HIDDEN), (0, OUT_PAD - OUT_SIZE)))
    b2_p = jnp.pad(b2.astype(jnp.float32), ((0, 0), (0, OUT_PAD - OUT_SIZE)),
                   constant_values=NEG_BIG)
    return w1_p, b1_p, w2_p, b2_p


@jax.jit
def full_forward(x_nchw, w1_p, b1_p, w2_p, b2_p):
    # x.reshape(batch, -1) exactly like the PyTorch module; no pad/cast in the
    # wrapper — the kernel consumes (64, 784) f32 directly (full-array VMEM block).
    x2d = x_nchw.reshape(BATCH, -1)
    return pl.pallas_call(
        mlp_kernel,
        out_shape=jax.ShapeDtypeStruct((BATCH, OUT_SIZE), jnp.float32),
        # Whole problem (~0.9 MiB of operands) is VMEM resident: no grid, no
        # per-step pipelining bookkeeping.
        in_specs=[pl.BlockSpec(memory_space=pltpu.MemorySpace.VMEM)] * 5,
        out_specs=pl.BlockSpec(memory_space=pltpu.MemorySpace.VMEM),
    )(x2d, w1_p, b1_p, w2_p, b2_p)


def init_params(key):
    # Deterministic init mirroring nn.Linear's uniform(-1/sqrt(fan_in), 1/sqrt(fan_in)).
    k1, k2, k3, k4 = jax.random.split(key, 4)
    lim1 = 1.0 / jnp.sqrt(jnp.float32(IN_SIZE))
    lim2 = 1.0 / jnp.sqrt(jnp.float32(HIDDEN))
    # Stored pre-transposed as (in, out) so the kernel does x @ W.
    w1 = jax.random.uniform(k1, (IN_SIZE, HIDDEN), jnp.float32, -lim1, lim1)
    b1 = jax.random.uniform(k2, (1, HIDDEN), jnp.float32, -lim1, lim1)
    w2 = jax.random.uniform(k3, (HIDDEN, OUT_SIZE), jnp.float32, -lim2, lim2)
    b2 = jax.random.uniform(k4, (1, OUT_SIZE), jnp.float32, -lim2, lim2)
    return w1, b1, w2, b2


def reference_forward(x_nchw, w1, b1, w2, b2):
    # Pure-JAX f32 reference for the correctness check.
    x2d = x_nchw.reshape(BATCH, -1).astype(jnp.float32)
    h = jnp.tanh(x2d @ w1 + b1)
    z = h @ w2 + b2
    return jax.nn.log_softmax(z, axis=1)


if __name__ == "__main__":
    key = jax.random.PRNGKey(0)
    kx, kp = jax.random.split(key)

    # Input consistent with the module: batch_size=64, 28x28 single-channel images (NCHW).
    x = jax.random.normal(kx, (BATCH, 1, 28, 28), dtype=jnp.float32)
    w1, b1, w2, b2 = init_params(kp)
    w1_p, b1_p, w2_p, b2_p = pad_params(w1, b1, w2, b2)

    out = jax.block_until_ready(full_forward(x, w1_p, b1_p, w2_p, b2_p))

    ref = reference_forward(x, w1, b1, w2, b2)
    assert out.shape == (BATCH, OUT_SIZE)
    # bf16 weights/activations inside the kernel -> relaxed tolerance vs f32 reference.
    assert jnp.allclose(out, ref, atol=5e-2, rtol=0.0), "mismatch vs JAX reference"

    print("KERNEL_OK")
</pallas_src>

<mosaic_0001>
module attributes {stable_mosaic.version = 11 : i64} {
  func.func @mlp_kernel(%arg0: memref<64x784xf32, #tpu.memory_space<vmem>>, %arg1: memref<784x384xbf16, #tpu.memory_space<vmem>>, %arg2: memref<1x384xf32, #tpu.memory_space<vmem>>, %arg3: memref<384x128xbf16, #tpu.memory_space<vmem>>, %arg4: memref<1x128xf32, #tpu.memory_space<vmem>>, %arg5: memref<64x10xf32, #tpu.memory_space<vmem>>) attributes {dimension_semantics = [], scalar_prefetch = 0 : i64, scratch_operands = 0 : i64, tpu.core_type = #tpu.core_type<tc>} {
    %c0 = arith.constant 0 : index
    %c0_0 = arith.constant 0 : index
    %0 = vector.load %arg0[%c0, %c0_0] : memref<64x784xf32, #tpu.memory_space<vmem>>, vector<64x784xf32>
    %1 = arith.truncf %0 : vector<64x784xf32> to vector<64x784xbf16>
    %c0_1 = arith.constant 0 : index
    %c0_2 = arith.constant 0 : index
    %2 = vector.load %arg1[%c0_1, %c0_2] : memref<784x384xbf16, #tpu.memory_space<vmem>>, vector<784x384xbf16>
    %cst = arith.constant dense<0.000000e+00> : vector<64x384xf32>
    %3 = tpu.matmul %1, %2, %cst {dimension_numbers = #tpu.dot_dimension_numbers<[1], [0], [0], [1], [0, 0, 1, 1], [], []>} : vector<64x784xbf16>, vector<784x384xbf16>, vector<64x384xf32> -> vector<64x384xf32>
    %c0_3 = arith.constant 0 : index
    %c0_4 = arith.constant 0 : index
    %4 = vector.load %arg2[%c0_3, %c0_4] : memref<1x384xf32, #tpu.memory_space<vmem>>, vector<1x384xf32>
    %5 = vector.broadcast %4 : vector<1x384xf32> to vector<64x384xf32>
    %6 = arith.addf %3, %5 : vector<64x384xf32>
    %7 = math.tanh %6 : vector<64x384xf32>
    %8 = arith.truncf %7 : vector<64x384xf32> to vector<64x384xbf16>
    %c0_5 = arith.constant 0 : index
    %c0_6 = arith.constant 0 : index
    %9 = vector.load %arg3[%c0_5, %c0_6] : memref<384x128xbf16, #tpu.memory_space<vmem>>, vector<384x128xbf16>
    %cst_7 = arith.constant dense<0.000000e+00> : vector<64x128xf32>
    %10 = tpu.matmul %8, %9, %cst_7 {dimension_numbers = #tpu.dot_dimension_numbers<[1], [0], [0], [1], [0, 0, 1, 1], [], []>} : vector<64x384xbf16>, vector<384x128xbf16>, vector<64x128xf32> -> vector<64x128xf32>
    %c0_8 = arith.constant 0 : index
    %c0_9 = arith.constant 0 : index
    %11 = vector.load %arg4[%c0_8, %c0_9] : memref<1x128xf32, #tpu.memory_space<vmem>>, vector<1x128xf32>
    %12 = vector.broadcast %11 : vector<1x128xf32> to vector<64x128xf32>
    %13 = arith.addf %10, %12 : vector<64x128xf32>
    %cst_10 = arith.constant dense<0xFF800000> : vector<64xf32>
    %14 = vector.multi_reduction <maximumf>, %13, %cst_10 [1] : vector<64x128xf32> to vector<64xf32>
    %15 = vector.shape_cast %14 : vector<64xf32> to vector<64x1xf32>
    %16 = vector.broadcast %15 : vector<64x1xf32> to vector<64x128xf32>
    %17 = arith.subf %13, %16 : vector<64x128xf32>
    %18 = math.exp %17 : vector<64x128xf32>
    %cst_11 = arith.constant dense<0.000000e+00> : vector<64xf32>
    %19 = vector.multi_reduction <add>, %18, %cst_11 [1] : vector<64x128xf32> to vector<64xf32>
    %20 = vector.shape_cast %19 : vector<64xf32> to vector<64x1xf32>
    %21 = math.log %20 : vector<64x1xf32>
    %22 = vector.broadcast %21 : vector<64x1xf32> to vector<64x128xf32>
    %23 = arith.subf %17, %22 : vector<64x128xf32>
    %24 = vector.extract_strided_slice %23 {offsets = [0, 0], sizes = [64, 10], strides = [1, 1]} : vector<64x128xf32> to vector<64x10xf32>
    %c0_12 = arith.constant 0 : index
    %c0_13 = arith.constant 0 : index
    %25 = vector.load %arg5[%c0_12, %c0_13] : memref<64x10xf32, #tpu.memory_space<vmem>>, vector<64x10xf32>
    tpu.vector_store %arg5[%c0_12, %c0_13], %24 {strides = array<i32>} : memref<64x10xf32, #tpu.memory_space<vmem>>, vector<64x10xf32>,
    return
  }
}

</mosaic_0001>

<bundles_post_ra>
// kernel: full_forward.1
= control target key start
LH: loop header
LB: loop body
LE: loop exit
PB: predicated region body
PF: predicated region fallthrough
CT: control target
= control target key end

     0   :  { %10 = vsyncpa [#allocation3], 0  ;;  %s2873_s18 = smov [#allocation2]   ;;  %s3962_s0 = inlined_call_operand.vmem [shape: f32[64,784], index: 0, kind: input, shape index: {}]   ;;  %s3963_s1 = inlined_call_operand.vmem [shape: bf16[784,384], index: 1, kind: input, shape index: {}]   ;;  %s3964_s2 = inlined_call_operand.vmem [shape: f32[1,384], index: 2, kind: input, shape index: {}]   ;;  %s3965_s3 = inlined_call_operand.hbm [shape: bf16[384,128], index: 3, kind: input, shape index: {}]   ;;  %s3966_s4 = inlined_call_operand.vmem [shape: f32[1,128], index: 4, kind: input, shape index: {}]   ;;  %s3967_s5 = inlined_call_operand.vmem [shape: f32[64,10], index: 5, kind: output, shape index: {}]  }
   0x1   :  { %s22_s19 = sshll.u32 %s2873_s18, 4  ;;  %s23_s19 = int_to_ptr.vmem [resolvable:$true] %s22_s19 }
   0x2   :  { %s2859_s20 = scalar_lea.vmem %s23_s19, 3072  ;;  %p2864_p1 = scmp.lt.s32.totalorder %s23_s19, %s23_s19 }
   0x3   :  { %p2860_p0 = scmp.ne.s32.totalorder %s23_s19, %s2859_s20  ;;  %p2865_p2 = scmp.lt.s32.totalorder %s2859_s20, %s2859_s20 }
   0x5   :  { %p2866_p3 = por %p2865_p2, %p2864_p1 }
   0x7   :  { %p2867_p4 = pnand %p2866_p3, %p2860_p0 }
   0x9   :  { %2870 = shalt.err (!%p2867_p4)
}
   0xa   :  { %s2874_s21 = smov 64   ;;  %s2875_s22 = smov 4  }
   0xb   :  { %28 = dma.hbm_to_vmem [thread:$0]  %s3965_s3, 3072, %s23_s19, [#allocation3], %s2874_s21, %s2874_s21, %s2875_s22  }
   0xc   :  { %2871 = dma.done.wait [#allocation3], 3072  }
   0xd   :  { %2872 = vsyncadd [#allocation3], 4294964224  ;;  %v2551_v0 = vld [vmem:[%s3963_s1 + $0xac] ss:$12 sps:$4 sm:$0xff]   ;;  %v2553_v1 = vld [vmem:[%s3963_s1 + $0xa8] ss:$12 sps:$4 sm:$0xff]  }
   0xe   :  { %1129 = vmatprep.subr.bf16.mxu0 %v2551_v0  ;;  %v2554_v2 = vld [vmem:[%s3963_s1 + $0x22c] ss:$12 sps:$4 sm:$0xff]   ;;  %v2556_v3 = vld [vmem:[%s3963_s1 + $0x228] ss:$12 sps:$4 sm:$0xff]   ;;  %v2559_v5 = vld [vmem:[%s3963_s1 + $0x90] ss:$12 sps:$4 sm:$0xff]  }
   0xf   :  { %1130 = vmatpush1.bf16.msra.mxu0 %v2553_v1  ;;  %v2557_v4 = vld [vmem:[%s3963_s1 + $0x94] ss:$12 sps:$4 sm:$0xff]   ;;  %1202 = vmatprep.subr.bf16.mxu1 %v2554_v2  ;;  %v2562_v7 = vld [vmem:[%s3963_s1 + $0x210] ss:$12 sps:$4 sm:$0xff]   ;;  %v2565_v9 = vld [vmem:[%s3963_s1 + $0x78] ss:$12 sps:$4 sm:$0xff]  }
  0x10   :  { %v2560_v6 = vld [vmem:[%s3963_s1 + $0x214] ss:$12 sps:$4 sm:$0xff]   ;;  %1203 = vmatpush1.bf16.msra.mxu1 %v2556_v3  ;;  %1131 = vmatprep.subr.bf16.mxu0 %v2557_v4  ;;  %v2563_v8 = vld [vmem:[%s3963_s1 + $0x7c] ss:$12 sps:$4 sm:$0xff]   ;;  %v2569_v11 = vld [vmem:[%s3963_s1 + $0x64] ss:$12 sps:$4 sm:$0xff]  }
  0x11   :  { %1204 = vmatprep.subr.bf16.mxu1 %v2560_v6  ;;  %v2566_v10 = vld [vmem:[%s3963_s1 + $0x1fc] ss:$12 sps:$4 sm:$0xff]   ;;  %v2568_v12 = vld [vmem:[%s3963_s1 + $0x1f8] ss:$12 sps:$4 sm:$0xff]   ;;  %v2571_v14 = vld [vmem:[%s3963_s1 + $0x60] ss:$12 sps:$4 sm:$0xff]  }
  0x12   :  { %v2572_v13 = vld [vmem:[%s3963_s1 + $0x1e4] ss:$12 sps:$4 sm:$0xff]   ;;  %v2575_v15 = vld [vmem:[%s3963_s1 + $0x4c] ss:$12 sps:$4 sm:$0xff]   ;;  %v2577_v18 = vld [vmem:[%s3963_s1 + $0x48] ss:$12 sps:$4 sm:$0xff]  }
  0x13   :  { %1132 = vmatpush1.bf16.msra.mxu0 %v2559_v5  ;;  %v2574_v16 = vld [vmem:[%s3963_s1 + $0x1e0] ss:$12 sps:$4 sm:$0xff]   ;;  %v2580_v20 = vld [vmem:[%s3963_s1 + $0x1c8] ss:$12 sps:$4 sm:$0xff]   ;;  %v2583_v22 = vld [vmem:[%s3963_s1 + $0x30] ss:$12 sps:$4 sm:$0xff]  }
  0x14   :  { %1133 = vmatprep.subr.bf16.mxu0 %v2563_v8  ;;  %1205 = vmatpush1.bf16.msra.mxu1 %v2562_v7  ;;  %v2578_v17 = vld [vmem:[%s3963_s1 + $0x1cc] ss:$12 sps:$4 sm:$0xff]   ;;  %v2581_v19 = vld [vmem:[%s3963_s1 + $0x34] ss:$12 sps:$4 sm:$0xff]   ;;  %v2587_v23 = vld [vmem:[%s3963_s1 + $0x1c] ss:$12 sps:$4 sm:$0xff]  }
  0x15   :  { %1206 = vmatprep.subr.bf16.mxu1 %v2566_v10  ;;  %v2584_v21 = vld [vmem:[%s3963_s1 + $0x1b4] ss:$12 sps:$4 sm:$0xff]   ;;  %v2586_v24 = vld [vmem:[%s3963_s1 + $0x1b0] ss:$12 sps:$4 sm:$0xff]   ;;  %v2589_v26 = vld [vmem:[%s3963_s1 + $0x18] ss:$12 sps:$4 sm:$0xff]  }
  0x16   :  { %v2590_v25 = vld [vmem:[%s3963_s1 + $0x19c] ss:$12 sps:$4 sm:$0xff]   ;;  %v2593_v27 = vld [vmem:[%s3963_s1 + $0x4] ss:$12 sps:$4 sm:$0xff]   ;;  %v2595_v30 = vld [vmem:[%s3963_s1] ss:$12 sps:$4 sm:$0xff]  }
  0x17   :  { %1134 = vmatpush1.bf16.msra.mxu0 %v2565_v9  ;;  %v2592_v28 = vld [vmem:[%s3963_s1 + $0x198] ss:$12 sps:$4 sm:$0xff]   ;;  %v2598_v32 = vld [vmem:[%s3963_s1 + $0x180] ss:$12 sps:$4 sm:$0xff]   ;;  %v2601_v34 = vld [vmem:[%s3963_s1 + $0x168] ss:$12 sps:$4 sm:$0xff]  }
  0x18   :  { %1135 = vmatprep.subr.bf16.mxu0 %v2569_v11  ;;  %1207 = vmatpush1.bf16.msra.mxu1 %v2568_v12  ;;  %v2596_v29 = vld [vmem:[%s3963_s1 + $0x184] ss:$12 sps:$4 sm:$0xff]   ;;  %v2599_v31 = vld [vmem:[%s3963_s1 + $0x16c] ss:$12 sps:$4 sm:$0xff]   ;;  %v2605_v35 = vld [vmem:[%s3963_s1 + $0x154] ss:$12 sps:$4 sm:$0xff]  }
  0x19   :  { %1208 = vmatprep.subr.bf16.mxu1 %v2572_v13  ;;  %v2602_v33 = vld [vmem:[%s3963_s1 + $0x2ec] ss:$12 sps:$4 sm:$0xff]   ;;  %v2604_v36 = vld [vmem:[%s3963_s1 + $0x2e8] ss:$12 sps:$4 sm:$0xff]   ;;  %v2607_v38 = vld [vmem:[%s3963_s1 + $0x150] ss:$12 sps:$4 sm:$0xff]  }
  0x1a   :  { %v2608_v37 = vld [vmem:[%s3963_s1 + $0x2d4] ss:$12 sps:$4 sm:$0xff]   ;;  %v2611_v39 = vld [vmem:[%s3963_s1 + $0x13c] ss:$12 sps:$4 sm:$0xff]   ;;  %v2613_v42 = vld [vmem:[%s3963_s1 + $0x138] ss:$12 sps:$4 sm:$0xff]  }
  0x1b   :  { %1136 = vmatpush1.bf16.msra.mxu0 %v2571_v14  ;;  %v2610_v40 = vld [vmem:[%s3963_s1 + $0x2d0] ss:$12 sps:$4 sm:$0xff]   ;;  %v2616_v44 = vld [vmem:[%s3963_s1 + $0x2b8] ss:$12 sps:$4 sm:$0xff]   ;;  %v36_v46 = vld [vmem:[%s3962_s0 + $0x8] sm:$0xff]  ;;  %vm1116_vm0 = vcmask 130048  }
  0x1c   :  { %1137 = vmatprep.subr.bf16.mxu0 %v2575_v15  ;;  %1209 = vmatpush1.bf16.msra.mxu1 %v2574_v16  ;;  %v2614_v41 = vld [vmem:[%s3963_s1 + $0x2bc] ss:$12 sps:$4 sm:$0xff]   ;;  %v2617_v43 = vld [vmem:[%s3963_s1 + $0x124] ss:$12 sps:$4 sm:$0xff]   ;;  %v2619_v48 = vld [vmem:[%s3963_s1 + $0x120] ss:$12 sps:$4 sm:$0xff]  }
  0x1d   :  { %1210 = vmatprep.subr.bf16.mxu1 %v2578_v17  ;;  %v2620_v45 = vld [vmem:[%s3963_s1 + $0x2a4] ss:$12 sps:$4 sm:$0xff]   ;;  %v2623_v50 = vld [vmem:[%s3963_s1 + $0x10c] ss:$12 sps:$4 sm:$0xff]   ;;  %v2625_v56 = vld [vmem:[%s3963_s1 + $0x108] ss:$12 sps:$4 sm:$0xff]  }
  0x1e   :  { %v43_v47 = vld [vmem:[%s3962_s0 + $0x40] sm:$0xff]  ;;  %v38_v52 = vld [vmem:[%s3962_s0 + $0x18] sm:$0xff]  ;;  %v45_v53 = vld [vmem:[%s3962_s0 + $0x50] sm:$0xff]  ;;  %vm2126_vm1 = vcmask 80896  }
  0x1f   :  { %1138 = vmatpush1.bf16.msra.mxu0 %v2577_v18  ;;  %v3057_v49 = vpack.c.bf16 %v43_v47, %v36_v46  ;;  %v2622_v51 = vld [vmem:[%s3963_s1 + $0x2a0] ss:$12 sps:$4 sm:$0xff]   ;;  %v3075_v55 = vpack.c.bf16 %v45_v53, %v38_v52  ;;  %v2628_v58 = vld [vmem:[%s3963_s1 + $0x288] ss:$12 sps:$4 sm:$0xff]   ;;  %v2631_v60 = vld [vmem:[%s3963_s1 + $0xf0] ss:$12 sps:$4 sm:$0xff]  }
  0x20   :  { %1139 = vmatprep.subr.bf16.mxu0 %v2581_v19  ;;  %1211 = vmatpush1.bf16.msra.mxu1 %v2580_v20  ;;  %v2626_v54 = vld [vmem:[%s3963_s1 + $0x28c] ss:$12 sps:$4 sm:$0xff]   ;;  %v2629_v57 = vld [vmem:[%s3963_s1 + $0xf4] ss:$12 sps:$4 sm:$0xff]   ;;  %v2635_v61 = vld [vmem:[%s3963_s1 + $0xdc] ss:$12 sps:$4 sm:$0xff]  }
  0x21   :  { %1212 = vmatprep.subr.bf16.mxu1 %v2584_v21  ;;  %1161 = vmatprep.mubr.bf16.mxu0 %v3057_v49  ;;  %v2632_v59 = vld [vmem:[%s3963_s1 + $0x274] ss:$12 sps:$4 sm:$0xff]   ;;  %v2634_v62 = vld [vmem:[%s3963_s1 + $0x270] ss:$12 sps:$4 sm:$0xff]   ;;  %v2637_v0 = vld [vmem:[%s3963_s1 + $0xd8] ss:$12 sps:$4 sm:$0xff]  }
  0x22   :  { %1234 = vmatprep.mubr.bf16.mxu1 %v3075_v55  ;;  %v2638_v63 = vld [vmem:[%s3963_s1 + $0x25c] ss:$12 sps:$4 sm:$0xff]   ;;  %v2641_v1 = vld [vmem:[%s3963_s1 + $0xc4] ss:$12 sps:$4 sm:$0xff]   ;;  %v2643_v3 = vld [vmem:[%s3963_s1 + $0xc0] ss:$12 sps:$4 sm:$0xff]  }
  0x23   :  { %1140 = vmatpush1.bf16.msra.mxu0 %v2583_v22  ;;  %v2640_v2 = vld [vmem:[%s3963_s1 + $0x258] ss:$12 sps:$4 sm:$0xff]   ;;  %v2646_v6 = vld [vmem:[%s3963_s1 + $0x240] ss:$12 sps:$4 sm:$0xff]   ;;  %v57_v10 = vld [vmem:[%s3962_s0 + $0xb0] sm:$0xff] }
  0x24   :  { %1141 = vmatprep.subr.bf16.mxu0 %v2587_v23  ;;  %1213 = vmatpush1.bf16.msra.mxu1 %v2586_v24  ;;  %v2644_v4 = vld [vmem:[%s3963_s1 + $0x244] ss:$12 sps:$4 sm:$0xff]   ;;  %v42_v7 = vld [vmem:[%s3962_s0 + $0x38] sm:$0xff]  ;;  %v44_v12 = vld [vmem:[%s3962_s0 + $0x48] sm:$0xff] }
  0x25   :  { %1214 = vmatprep.subr.bf16.mxu1 %v2590_v25  ;;  %v35_v5 = vld [vmem:[%s3962_s0] sm:$0xff]  ;;  %v2649_v8 = vld [vmem:[%s3963_s1 + $0x3ac] ss:$12 sps:$4 sm:$0xff]   ;;  %v37_v11 = vld [vmem:[%s3962_s0 + $0x10] sm:$0xff] }
  0x26   :  { %v50_v9 = vld [vmem:[%s3962_s0 + $0x78] sm:$0xff]  ;;  %v52_v13 = vld [vmem:[%s3962_s0 + $0x88] sm:$0xff]  ;;  %v3144_v14 = vpack.c.bf16 %v42_v7, %v35_v5  ;;  %v59_v15 = vld [vmem:[%s3962_s0 + $0xc0] sm:$0xff]  ;;  %v3157_v19 = vpack.c.bf16 %v44_v12, %v37_v11  ;;  %v2876_v7 = vmov 0  }
  0x27   :  { %1142 = vmatpush1.bf16.msra.mxu0 %v2589_v26  ;;  %v2661_v16 = vld [vmem:[%s3963_s1 + $0x484] ss:$12 sps:$4 sm:$0xff]   ;;  %v2647_v17 = vld [vmem:[%s3963_s1 + $0x3a8] ss:$12 sps:$4 sm:$0xff]   ;;  %v3155_v18 = vpack.c.bf16 %v57_v10, %v50_v9  ;;  %v3165_v22 = vpack.c.bf16 %v59_v15, %v52_v13  ;;  %v2659_v23 = vld [vmem:[%s3963_s1 + $0x480] ss:$12 sps:$4 sm:$0xff]  }
  0x28   :  { %1143 = vmatprep.subr.bf16.mxu0 %v2593_v27  ;;  %1215 = vmatpush1.bf16.msra.mxu1 %v2592_v28  ;;  %v2652_v20 = vld [vmem:[%s3963_s1 + $0x394] ss:$12 sps:$4 sm:$0xff]   ;;  %v2650_v21 = vld [vmem:[%s3963_s1 + $0x390] ss:$12 sps:$4 sm:$0xff]   ;;  %v56_v26 = vld [vmem:[%s3962_s0 + $0xa8] sm:$0xff] }
  0x29   :  { %1216 = vmatprep.subr.bf16.mxu1 %v2596_v29  ;;  %v2655_v24 = vld [vmem:[%s3963_s1 + $0x37c] ss:$12 sps:$4 sm:$0xff]   ;;  %v49_v25 = vld [vmem:[%s3962_s0 + $0x70] sm:$0xff]  ;;  %v51_v28 = vld [vmem:[%s3962_s0 + $0x80] sm:$0xff] }
  0x2a   :  { %v64_v27 = vld [vmem:[%s3962_s0 + $0xe8] sm:$0xff]  ;;  %v71_v29 = vld [vmem:[%s3962_s0 + $0x120] sm:$0xff]  ;;  %v85_v46 = vld [vmem:[%s3962_s0 + $0x190] sm:$0xff] }
  0x2b   :  { %1144 = vmatpush1.bf16.msra.mxu0 %v2595_v30  ;;  %v2677_v30 = vld [vmem:[%s3963_s1 + $0x170] ss:$12 sps:$4 sm:$0xff]   ;;  %v72_v47 = vld [vmem:[%s3962_s0 + $0x128] sm:$0xff]  ;;  %v47_v10 = vld [vmem:[%s3962_s0 + $0x60] sm:$0xff] }
  0x2c   :  { %1145 = vmatprep.subr.bf16.mxu0 %v2599_v31  ;;  %1217 = vmatpush1.bf16.msra.mxu1 %v2598_v32  ;;  %v58_v31 = vld [vmem:[%s3962_s0 + $0xb8] sm:$0xff]  ;;  %v3198_v32 = vpack.c.bf16 %v56_v26, %v49_v25  ;;  %v2662_v52 = vld [vmem:[%s3963_s1 + $0x348] ss:$12 sps:$4 sm:$0xff]   ;;  %v2687_v26 = vld [vmem:[%s3963_s1 + $0x140] ss:$12 sps:$4 sm:$0xff]  }
  0x2d   :  { %1218 = vmatprep.subr.bf16.mxu1 %v2602_v33  ;;  %v66_v33 = vld [vmem:[%s3962_s0 + $0xf8] sm:$0xff]  ;;  %v40_v9 = vld [vmem:[%s3962_s0 + $0x28] sm:$0xff] }
  0x2e   :  { %v2676_v5 = vld [vmem:[%s3963_s1 + $0x46c] ss:$12 sps:$4 sm:$0xff]   ;;  %v2674_v11 = vld [vmem:[%s3963_s1 + $0x468] ss:$12 sps:$4 sm:$0xff]   ;;  %v2678_v12 = vld [vmem:[%s3963_s1 + $0xb0] ss:$12 sps:$4 sm:$0xff]   ;;  %v3325_v13 = vpack.c.bf16 %v47_v10, %v40_v9 }
  0x2f   :  { %1146 = vmatpush2.bf16.msra.mxu0 %v2601_v34  ;;  %v73_v34 = vld [vmem:[%s3962_s0 + $0x130] sm:$0xff]  ;;  %v62_v25 = vld [vmem:[%s3962_s0 + $0xd8] sm:$0xff] }
  0x30   :  { %1147 = vmatprep.subr.bf16.mxu0 %v2605_v35  ;;  %1219 = vmatpush2.bf16.msra.mxu1 %v2604_v36  ;;  %v2653_v35 = vld [vmem:[%s3963_s1 + $0x378] ss:$12 sps:$4 sm:$0xff]   ;;  %v3209_v36 = vpack.c.bf16 %v71_v29, %v64_v27  ;;  %v2688_v29 = vld [vmem:[%s3963_s1 + $0x80] ss:$12 sps:$4 sm:$0xff]   ;;  %v2715_v9 = vld [vmem:[%s3963_s1 + $0x230] ss:$12 sps:$4 sm:$0xff]  }
  0x31   :  { %1220 = vmatprep.subr.bf16.mxu1 %v2608_v37  ;;  %v3211_v37 = vpack.c.bf16 %v58_v31, %v51_v28  ;;  %v2684_v27 = vld [vmem:[%s3963_s1 + $0x438] ss:$12 sps:$4 sm:$0xff]   ;;  %v2689_v31 = vld [vmem:[%s3963_s1 + $0x420] ss:$12 sps:$4 sm:$0xff]  }
  0x33   :  { %1148 = vmatpush2.bf16.msra.mxu0 %v2607_v38  ;;  %v2658_v38 = vld [vmem:[%s3963_s1 + $0x364] ss:$12 sps:$4 sm:$0xff]  }
  0x34   :  { %1149 = vmatprep.subr.bf16.mxu0 %v2611_v39  ;;  %1221 = vmatpush2.bf16.msra.mxu1 %v2610_v40  ;;  %v2656_v39 = vld [vmem:[%s3963_s1 + $0x360] ss:$12 sps:$4 sm:$0xff]   ;;  %v3219_v40 = vpack.c.bf16 %v73_v34, %v66_v33  ;;  %v2692_v33 = vld [vmem:[%s3963_s1 + $0x128] ss:$12 sps:$4 sm:$0xff]  }
  0x35   :  { %1222 = vmatprep.subr.bf16.mxu1 %v2614_v41  ;;  %v2664_v41 = vld [vmem:[%s3963_s1 + $0x34c] ss:$12 sps:$4 sm:$0xff]   ;;  %v2693_v34 = vld [vmem:[%s3963_s1 + $0x68] ss:$12 sps:$4 sm:$0xff]  }
  0x37   :  { %1150 = vmatpush2.bf16.msra.mxu0 %v2613_v42  ;;  %v63_v42 = vld [vmem:[%s3962_s0 + $0xe0] sm:$0xff] }
  0x38   :  { %1151 = vmatprep.subr.bf16.mxu0 %v2617_v43  ;;  %1223 = vmatpush2.bf16.msra.mxu1 %v2616_v44  ;;  %v70_v43 = vld [vmem:[%s3962_s0 + $0x118] sm:$0xff]  ;;  %v65_v44 = vld [vmem:[%s3962_s0 + $0xf0] sm:$0xff] }
  0x39   :  { %1224 = vmatprep.subr.bf16.mxu1 %v2620_v45  ;;  %v78_v45 = vld [vmem:[%s3962_s0 + $0x158] sm:$0xff] }
  0x3a   :  { %v3257_v53 = vpack.c.bf16 %v85_v46, %v78_v45  ;;  %v2698_v45 = vld [vmem:[%s3963_s1 + $0x50] ss:$12 sps:$4 sm:$0xff]  }
  0x3b   :  { %1152 = vmatpush2.bf16.msra.mxu0 %v2619_v48  ;;  %v80_v48 = vld [vmem:[%s3962_s0 + $0x168] sm:$0xff]  ;;  %v2699_v46 = vld [vmem:[%s3963_s1 + $0x3f0] ss:$12 sps:$4 sm:$0xff]  }
  0x3c   :  { %1153 = vmatprep.subr.bf16.mxu0 %v2623_v50  ;;  %1225 = vmatpush2.bf16.msra.mxu1 %v2622_v51  ;;  %v3249_v50 = vpack.c.bf16 %v70_v43, %v63_v42  ;;  %v87_v51 = vld [vmem:[%s3962_s0 + $0x1a0] sm:$0xff]  ;;  %v2694_v42 = vld [vmem:[%s3963_s1 + $0x408] ss:$12 sps:$4 sm:$0xff]  }
  0x3d   :  { %1226 = vmatprep.subr.bf16.mxu1 %v2626_v54  ;;  %v3259_v54 = vpack.c.bf16 %v72_v47, %v65_v44  ;;  %v2701_v44 = vld [vmem:[%s3963_s1 + $0x3f4] ss:$12 sps:$4 sm:$0xff]   ;;  %v2702_v47 = vld [vmem:[%s3963_s1 + $0xf8] ss:$12 sps:$4 sm:$0xff]  }
  0x3f   :  { %1154 = vmatpush2.bf16.msra.mxu0 %v2625_v56  ;;  %v2667_v56 = vld [vmem:[%s3963_s1 + $0x334] ss:$12 sps:$4 sm:$0xff]  }
  0x40   :  { %1155 = vmatprep.subr.bf16.mxu0 %v2629_v57  ;;  %1227 = vmatpush2.bf16.msra.mxu1 %v2628_v58  ;;  %v2665_v57 = vld [vmem:[%s3963_s1 + $0x330] ss:$12 sps:$4 sm:$0xff]   ;;  %v3267_v58 = vpack.c.bf16 %v87_v51, %v80_v48  ;;  %v2703_v48 = vld [vmem:[%s3963_s1 + $0x38] ss:$12 sps:$4 sm:$0xff]  }
  0x41   :  { %1228 = vmatprep.subr.bf16.mxu1 %v2632_v59  ;;  %v2670_v59 = vld [vmem:[%s3963_s1 + $0x31c] ss:$12 sps:$4 sm:$0xff]  }
  0x42   :  { %v2706_v51 = vld [vmem:[%s3963_s1 + $0x3dc] ss:$12 sps:$4 sm:$0xff]  }
  0x43   :  { %1156 = vmatpush2.bf16.msra.mxu0 %v2631_v60  ;;  %v77_v60 = vld [vmem:[%s3962_s0 + $0x150] sm:$0xff] }
  0x44   :  { %1157 = vmatprep.subr.bf16.mxu0 %v2635_v61  ;;  %1229 = vmatpush2.bf16.msra.mxu1 %v2634_v62  ;;  %v84_v61 = vld [vmem:[%s3962_s0 + $0x188] sm:$0xff]  ;;  %v79_v62 = vld [vmem:[%s3962_s0 + $0x160] sm:$0xff] }
  0x45   :  { %1230 = vmatprep.subr.bf16.mxu1 %v2638_v63  ;;  %v86_v63 = vld [vmem:[%s3962_s0 + $0x198] sm:$0xff] }
  0x47   :  { %1158 = vmatpush2.bf16.msra.mxu0 %v2637_v0  ;;  %v3288_v0 = vpack.c.bf16 %v84_v61, %v77_v60  ;;  %v2708_v60 = vld [vmem:[%s3963_s1 + $0x20] ss:$12 sps:$4 sm:$0xff]  }
  0x48   :  { %1159 = vmatprep.subr.bf16.mxu0 %v2641_v1  ;;  %1231 = vmatpush2.bf16.msra.mxu1 %v2640_v2  ;;  %v2668_v1 = vld [vmem:[%s3963_s1 + $0x318] ss:$12 sps:$4 sm:$0xff]   ;;  %v3293_v2 = vpack.c.bf16 %v86_v63, %v79_v62  ;;  %v2709_v63 = vld [vmem:[%s3963_s1 + $0x3c0] ss:$12 sps:$4 sm:$0xff]  }
  0x49   :  { %1232 = vmatprep.subr.bf16.mxu1 %v2644_v4  ;;  %v2671_v4 = vld [vmem:[%s3963_s1 + $0x300] ss:$12 sps:$4 sm:$0xff]   ;;  %v2711_v62 = vld [vmem:[%s3963_s1 + $0x3c4] ss:$12 sps:$4 sm:$0xff]  }
  0x4b   :  { %1160 = vmatpush2.bf16.msra.mxu0 %v2643_v3  ;;  %v2673_v3 = vld [vmem:[%s3963_s1 + $0x304] ss:$12 sps:$4 sm:$0xff]  }
  0x4c   :  { %1275 = vmatprep.subr.bf16.mxu0 %v2649_v8  ;;  %1233 = vmatpush2.bf16.msra.mxu1 %v2646_v6  ;;  %v41_v6 = vld [vmem:[%s3962_s0 + $0x30] sm:$0xff]  ;;  %v48_v8 = vld [vmem:[%s3962_s0 + $0x68] sm:$0xff] }
  0x4d   :  { %1362 = vmatprep.subr.bf16.mxu1 %v2661_v16  ;;  %v3327_v15 = vpack.c.bf16 %v48_v8, %v41_v6  ;;  %v2681_v16 = vld [vmem:[%s3963_s1 + $0x454] ss:$12 sps:$4 sm:$0xff]   ;;  %v2714_v6 = vld [vmem:[%s3963_s1 + $0x2f0] ss:$12 sps:$4 sm:$0xff]  }
  0x4e   :  { %1162 = vmatmul.mubr.bf16.vlgmr.msra.gmra.mxu0 %v3144_v14  ;;  %v61_v8 = vld [vmem:[%s3962_s0 + $0xd0] sm:$0xff] }
  0x4f   :  { %1276 = vmatpush1.bf16.msra.mxu0 %v2647_v17  ;;  %1171 = vmatprep.mubr.bf16.mxu0 %v3155_v18  ;;  %v2679_v17 = vld [vmem:[%s3963_s1 + $0x450] ss:$12 sps:$4 sm:$0xff]  }
  0x50   :  { %1235 = vmatmul.mubr.bf16.vlgmr.msra.gmra.mxu1 %v3157_v19  ;;  %1277 = vmatprep.subr.bf16.mxu0 %v2652_v20  ;;  %v2682_v20 = vld [vmem:[%s3963_s1 + $0x158] ss:$12 sps:$4 sm:$0xff]  }
  0x51   :  { %1244 = vmatprep.mubr.bf16.mxu1 %v3165_v22  ;;  %1363 = vmatpush1.bf16.msra.mxu1 %v2659_v23  ;;  %v2686_v23 = vld [vmem:[%s3963_s1 + $0x43c] ss:$12 sps:$4 sm:$0xff]  }
  0x52   :  { %2320 = vmatprep.subr.bf16.mxu1 %v2677_v30  ;;  %v2691_v30 = vld [vmem:[%s3963_s1 + $0x424] ss:$12 sps:$4 sm:$0xff]  }
  0x53   :  { %1278 = vmatpush1.bf16.msra.mxu0 %v2650_v21  ;;  %v2683_v21 = vld [vmem:[%s3963_s1 + $0x98] ss:$12 sps:$4 sm:$0xff]  }
  0x54   :  { %1279 = vmatprep.subr.bf16.mxu0 %v2655_v24  ;;  %v55_v24 = vld [vmem:[%s3962_s0 + $0xa0] sm:$0xff] }
  0x55   :  { %v3360_v28 = vpack.c.bf16 %v62_v25, %v55_v24  ;;  %v2722_v24 = vld [vmem:[%s3963_s1 + $0x2c0] ss:$12 sps:$4 sm:$0xff]   ;;  %v2721_v25 = vld [vmem:[%s3963_s1 + $0x398] ss:$12 sps:$4 sm:$0xff]  }
  0x56   :  { %1172 = vmatmul.mubr.bf16.gmra.mxu0 %v3198_v32 }
  0x57   :  { %1280 = vmatpush1.bf16.msra.mxu0 %v2653_v35  ;;  %1181 = vmatprep.mubr.bf16.mxu0 %v3209_v36  ;;  %v2696_v35 = vld [vmem:[%s3963_s1 + $0x40c] ss:$12 sps:$4 sm:$0xff]  }
  0x58   :  { %1245 = vmatmul.mubr.bf16.gmra.mxu1 %v3211_v37  ;;  %1281 = vmatprep.subr.bf16.mxu0 %v2658_v38  ;;  %v69_v38 = vld [vmem:[%s3962_s0 + $0x110] sm:$0xff] }
  0x59   :  { %1254 = vmatprep.mubr.bf16.mxu1 %v3219_v40 }
  0x5b   :  { %1282 = vmatpush1.bf16.msra.mxu0 %v2656_v39  ;;  %v76_v39 = vld [vmem:[%s3962_s0 + $0x148] sm:$0xff] }
  0x5c   :  { %1283 = vmatprep.subr.bf16.mxu0 %v2664_v41  ;;  %v2697_v41 = vld [vmem:[%s3963_s1 + $0x110] ss:$12 sps:$4 sm:$0xff]   ;;  %v3395_v43 = vpack.c.bf16 %v76_v39, %v69_v38  ;;  %v67_v38 = vld [vmem:[%s3962_s0 + $0x100] sm:$0xff] }
  0x5d   :  { %v74_v39 = vld [vmem:[%s3962_s0 + $0x138] sm:$0xff] }
  0x5e   :  { %1182 = vmatmul.mubr.bf16.gmra.mxu0 %v3249_v50 }
  0x5f   :  { %1284 = vmatpush1.bf16.msra.mxu0 %v2662_v52  ;;  %1191 = vmatprep.mubr.bf16.mxu0 %v3257_v53  ;;  %v83_v52 = vld [vmem:[%s3962_s0 + $0x180] sm:$0xff] }
  0x60   :  { %1255 = vmatmul.mubr.bf16.gmra.mxu1 %v3259_v54  ;;  %1285 = vmatprep.subr.bf16.mxu0 %v2667_v56  ;;  %v2704_v56 = vld [vmem:[%s3963_s1 + $0x3d8] ss:$12 sps:$4 sm:$0xff]  }
  0x61   :  { %1264 = vmatprep.mubr.bf16.mxu1 %v3267_v58 }
  0x63   :  { %1286 = vmatpush1.bf16.msra.mxu0 %v2665_v57  ;;  %v90_v57 = vld [vmem:[%s3962_s0 + $0x1b8] sm:$0xff] }
  0x64   :  { %1287 = vmatprep.subr.bf16.mxu0 %v2670_v59  ;;  %v2707_v59 = vld [vmem:[%s3963_s1 + $0xe0] ss:$12 sps:$4 sm:$0xff]   ;;  %v3433_v61 = vpack.c.bf16 %v90_v57, %v83_v52  ;;  %v81_v57 = vld [vmem:[%s3962_s0 + $0x170] sm:$0xff] }
  0x66   :  { %1192 = vmatmul.mubr.bf16.gmra.mxu0 %v3288_v0 }
  0x67   :  { %1288 = vmatpush1.bf16.msra.mxu0 %v2668_v1  ;;  %1307 = vmatprep.mubr.bf16.mxu0 %v3325_v13  ;;  %v2712_v1 = vld [vmem:[%s3963_s1 + $0xc8] ss:$12 sps:$4 sm:$0xff]  }
  0x68   :  { %1265 = vmatmul.mubr.bf16.gmra.mxu1 %v3293_v2  ;;  %1289 = vmatprep.subr.bf16.mxu0 %v2673_v3  ;;  %v39_v3 = vld [vmem:[%s3962_s0 + $0x20] sm:$0xff] }
  0x69   :  { %1380 = vmatprep.mubr.bf16.mxu1 %v2876_v7 }
  0x6b   :  { %1290 = vmatpush1.bf16.msra.mxu0 %v2671_v4  ;;  %v2713_v4 = vld [vmem:[%s3963_s1 + $0x8] ss:$12 sps:$4 sm:$0xff]  }
  0x6c   :  { %1291 = vmatprep.subr.bf16.mxu0 %v2676_v5  ;;  %v46_v5 = vld [vmem:[%s3962_s0 + $0x58] sm:$0xff] }
  0x6d   :  { %v3468_v10 = vpack.c.bf16 %v46_v5, %v39_v3  ;;  %v2739_v3 = vld [vmem:[%s3963_s1 + $0x1a0] ss:$12 sps:$4 sm:$0xff]   ;;  %v2743_v5 = vld [vmem:[%s3963_s1 + $0x188] ss:$12 sps:$4 sm:$0xff]  }
  0x6f   :  { %1292 = vmatpush2.bf16.msra.mxu0 %v2674_v11  ;;  %v2716_v11 = vld [vmem:[%s3963_s1 + $0x470] ss:$12 sps:$4 sm:$0xff]  }
  0x70   :  { %2287 = vmatmul.mubr.msk.bf16.vlgmr.msra.gmra.mxu1 %vm1116_vm0, %v3327_v15  ;;  %1293 = vmatprep.subr.bf16.mxu0 %v2681_v16 }
  0x71   :  { %2321 = vmatpush3.bf16.msra.mxu1 %v2678_v12  ;;  %1390 = vmatprep.mubr.bf16.mxu1 %v2876_v7  ;;  %v2717_v12 = vld [vmem:[%s3963_s1 + $0x3b0] ss:$12 sps:$4 sm:$0xff]  }
  0x72   :  { %2322 = vmatprep.subr.bf16.mxu1 %v2682_v20  ;;  %v2719_v20 = vld [vmem:[%s3963_s1 + $0x218] ss:$12 sps:$4 sm:$0xff]  }
  0x73   :  { %1294 = vmatpush2.bf16.msra.mxu0 %v2679_v17  ;;  %v2720_v17 = vld [vmem:[%s3963_s1 + $0x458] ss:$12 sps:$4 sm:$0xff]  }
  0x74   :  { %1295 = vmatprep.subr.bf16.mxu0 %v2686_v23  ;;  %v60_v23 = vld [vmem:[%s3962_s0 + $0xc8] sm:$0xff] }
  0x75   :  { %2323 = vmatpush3.bf16.msra.mxu1 %v2683_v21  ;;  %v53_v21 = vld [vmem:[%s3962_s0 + $0x90] sm:$0xff] }
  0x76   :  { %2324 = vmatprep.subr.bf16.mxu1 %v2687_v26  ;;  %v68_v26 = vld [vmem:[%s3962_s0 + $0x108] sm:$0xff] }
  0x77   :  { %1296 = vmatpush2.bf16.msra.mxu0 %v2684_v27  ;;  %v75_v27 = vld [vmem:[%s3962_s0 + $0x140] sm:$0xff] }
  0x78   :  { %2288 = vmatmul.mubr.msk.bf16.gmra.mxu1 %vm1116_vm0, %v3360_v28  ;;  %1297 = vmatprep.subr.bf16.mxu0 %v2691_v30  ;;  %v2724_v30 = vld [vmem:[%s3963_s1 + $0x440] ss:$12 sps:$4 sm:$0xff]  }
  0x79   :  { %2325 = vmatpush3.bf16.msra.mxu1 %v2688_v29  ;;  %1400 = vmatprep.mubr.bf16.mxu1 %v2876_v7  ;;  %v2723_v29 = vld [vmem:[%s3963_s1 + $0x200] ss:$12 sps:$4 sm:$0xff]  }
  0x7a   :  { %2326 = vmatprep.subr.bf16.mxu1 %v2692_v33  ;;  %v3523_v33 = vpack.c.bf16 %v75_v27, %v68_v26 }
  0x7b   :  { %1298 = vmatpush2.bf16.msra.mxu0 %v2689_v31  ;;  %v3515_v31 = vpack.c.bf16 %v60_v23, %v53_v21 }
  0x7c   :  { %1299 = vmatprep.subr.bf16.mxu0 %v2696_v35  ;;  %v2727_v35 = vld [vmem:[%s3963_s1 + $0x1e8] ss:$12 sps:$4 sm:$0xff]  }
  0x7d   :  { %2327 = vmatpush3.bf16.msra.mxu1 %v2693_v34  ;;  %v2728_v34 = vld [vmem:[%s3963_s1 + $0x428] ss:$12 sps:$4 sm:$0xff]  }
  0x7e   :  { %2328 = vmatprep.subr.bf16.mxu1 %v2697_v41  ;;  %v2730_v41 = vld [vmem:[%s3963_s1 + $0x290] ss:$12 sps:$4 sm:$0xff]  }
  0x7f   :  { %1300 = vmatpush2.bf16.msra.mxu0 %v2694_v42  ;;  %v82_v42 = vld [vmem:[%s3962_s0 + $0x178] sm:$0xff] }
  0x80   :  { %2289 = vmatmul.mubr.msk.bf16.gmra.mxu1 %vm1116_vm0, %v3395_v43  ;;  %1301 = vmatprep.subr.bf16.mxu0 %v2701_v44  ;;  %v89_v44 = vld [vmem:[%s3962_s0 + $0x1b0] sm:$0xff] }
  0x81   :  { %2329 = vmatpush3.bf16.msra.mxu1 %v2698_v45  ;;  %1410 = vmatprep.mubr.bf16.mxu1 %v2876_v7  ;;  %v54_v7 = vld [vmem:[%s3962_s0 + $0x98] sm:$0xff]  ;;  %v2729_v45 = vld [vmem:[%s3963_s1 + $0x368] ss:$12 sps:$4 sm:$0xff]   ;;  %v117_v52 = vpack.c.bf16 %v89_v44, %v82_v42 }
  0x82   :  { %2330 = vmatprep.subr.bf16.mxu1 %v2702_v47  ;;  %v3479_v16 = vpack.c.bf16 %v61_v8, %v54_v7  ;;  %v2731_v47 = vld [vmem:[%s3963_s1 + $0x1d0] ss:$12 sps:$4 sm:$0xff]   ;;  %v2745_v7 = vld [vmem:[%s3963_s1 + $0x308] ss:$12 sps:$4 sm:$0xff]  }
  0x83   :  { %1302 = vmatpush2.bf16.msra.mxu0 %v2699_v46  ;;  %v2732_v46 = vld [vmem:[%s3963_s1 + $0x410] ss:$12 sps:$4 sm:$0xff]   ;;  %v2760_v8 = vld [vmem:[#allocation2 + $0x8] sm:$0xff]  }
  0x84   :  { %1303 = vmatprep.subr.bf16.mxu0 %v2706_v51  ;;  %v2734_v51 = vld [vmem:[%s3963_s1 + $0x278] ss:$12 sps:$4 sm:$0xff]  }
  0x85   :  { %2331 = vmatpush3.bf16.msra.mxu1 %v2703_v48  ;;  %v109_v48 = vpack.c.bf16 %v74_v39, %v67_v38 }
  0x86   :  { %2332 = vmatprep.subr.bf16.mxu1 %v2707_v59  ;;  %v88_v59 = vld [vmem:[%s3962_s0 + $0x1a8] sm:$0xff] }
  0x87   :  { %1304 = vmatpush2.bf16.msra.mxu0 %v2704_v56  ;;  %v2735_v56 = vld [vmem:[%s3963_s1 + $0x1b8] ss:$12 sps:$4 sm:$0xff]  }
  0x88   :  { %2290 = vmatmul.mubr.msk.bf16.gmra.mxu1 %vm1116_vm0, %v3433_v61  ;;  %1305 = vmatprep.subr.bf16.mxu0 %v2711_v62  ;;  %v2737_v62 = vld [vmem:[%s3963_s1 + $0x338] ss:$12 sps:$4 sm:$0xff]  }
  0x89   :  { %2333 = vmatpush3.bf16.msra.mxu1 %v2708_v60  ;;  %1453 = vmatprep.mubr.bf16.mxu1 %v3057_v49  ;;  %v2718_v49 = vld [vmem:[%s3963_s1 + $0x2d8] ss:$12 sps:$4 sm:$0xff]   ;;  %v2738_v60 = vld [vmem:[%s3963_s1 + $0x260] ss:$12 sps:$4 sm:$0xff]  }
  0x8a   :  { %2334 = vmatprep.subr.bf16.mxu1 %v2712_v1  ;;  %v2740_v1 = vld [vmem:[%s3963_s1 + $0x3e0] ss:$12 sps:$4 sm:$0xff]  }
  0x8b   :  { %1306 = vmatpush2.bf16.msra.mxu0 %v2709_v63  ;;  %v116_v63 = vpack.c.bf16 %v88_v59, %v81_v57 }
  0x8c   :  { %2360 = vmatprep.subr.bf16.mxu0 %v2714_v6  ;;  %v2746_v6 = vld [vmem:[%s3963_s1 + $0x488] ss:$12 sps:$4 sm:$0xff]  }
  0x8d   :  { %2335 = vmatpush3.bf16.msra.mxu1 %v2713_v4  ;;  %v2744_v4 = vld [vmem:[%s3963_s1 + $0x3c8] ss:$12 sps:$4 sm:$0xff]  }
  0x8e   :  { %1308 = vmatmul.mubr.bf16.vlgmr.msra.gmra.mxu0 %v3468_v10  ;;  %2400 = vmatprep.subr.bf16.mxu1 %v2716_v11  ;;  %v3631_v11 = vld [vmem:[#allocation2 + $0xb8] sm:$0xff]  }
  0x8f   :  { %2361 = vmatpush3.bf16.msra.mxu0 %v2715_v9  ;;  %1317 = vmatprep.mubr.bf16.mxu0 %v3479_v16  ;;  %v2761_v9 = vld [vmem:[#allocation2 + $0x40] sm:$0xff]  }
  0x90   :  { %1454 = vmatmul.mubr.bf16.vlgmr.msra.gmra.mxu1 %v3144_v14  ;;  %2362 = vmatprep.subr.bf16.mxu0 %v2718_v49  ;;  %v2726_v14 = vld [vmem:[%s3963_s1 + $0x2a8] ss:$12 sps:$4 sm:$0xff]  }
  0x91   :  { %2401 = vmatpush3.bf16.msra.mxu1 %v2717_v12  ;;  %1461 = vmatprep.mubr.bf16.mxu1 %v3155_v18  ;;  %v2725_v18 = vld [vmem:[%s3963_s1 + $0x380] ss:$12 sps:$4 sm:$0xff]  }
  0x92   :  { %2402 = vmatprep.subr.bf16.mxu1 %v2720_v17  ;;  %v3640_v12 = vld [vmem:[#allocation2 + $0xa8] sm:$0xff]  }
  0x93   :  { %2363 = vmatpush3.bf16.msra.mxu0 %v2719_v20  ;;  %3985 = vst [vmem:[#allocation6_spill] sm:$0xff] %v3640_v12  ;;  %v3650_v20 = vld [vmem:[#allocation2 + $0xa0] sm:$0xff]  }
  0x94   :  { %2364 = vmatprep.subr.bf16.mxu0 %v2722_v24  ;;  %3986 = vst [vmem:[#allocation7_spill] sm:$0xff] %v3650_v20 }
  0x95   :  { %2403 = vmatpush3.bf16.msra.mxu1 %v2721_v25  ;;  %v3658_v25 = vld [vmem:[#allocation2 + $0x98] sm:$0xff]  }
  0x96   :  { %1318 = vmatmul.mubr.bf16.gmra.mxu0 %v3515_v31  ;;  %2404 = vmatprep.subr.bf16.mxu1 %v2724_v30  ;;  %3987 = vst [vmem:[#allocation8_spill] sm:$0xff] %v3658_v25  ;;  %v3666_v30 = vld [vmem:[#allocation2 + $0x90] sm:$0xff]  }
  0x97   :  { %2365 = vmatpush3.bf16.msra.mxu0 %v2723_v29  ;;  %1327 = vmatprep.mubr.bf16.mxu0 %v3523_v33  ;;  %3988 = vst [vmem:[#allocation9_spill] sm:$0xff] %v3666_v30 }
  0x98   :  { %1462 = vmatmul.mubr.bf16.gmra.mxu1 %v3198_v32  ;;  %2366 = vmatprep.subr.bf16.mxu0 %v2726_v14  ;;  %v2733_v32 = vld [vmem:[%s3963_s1 + $0x350] ss:$12 sps:$4 sm:$0xff]  }
  0x99   :  { %2405 = vmatpush3.bf16.msra.mxu1 %v2725_v18  ;;  %1469 = vmatprep.mubr.bf16.mxu1 %v3209_v36  ;;  %v2736_v36 = vld [vmem:[%s3963_s1 + $0x3f8] ss:$12 sps:$4 sm:$0xff]  }
  0x9a   :  { %2406 = vmatprep.subr.bf16.mxu1 %v2728_v34  ;;  %v3676_v34 = vld [vmem:[#allocation2 + $0x80] sm:$0xff]  }
  0x9b   :  { %2367 = vmatpush3.bf16.msra.mxu0 %v2727_v35  ;;  %3990 = vst [vmem:[#allocation11_spill] sm:$0xff] %v3676_v34 }
  0x9c   :  { %2368 = vmatprep.subr.bf16.mxu0 %v2730_v41 }
  0x9d   :  { %2407 = vmatpush3.bf16.msra.mxu1 %v2729_v45 }
  0x9e   :  { %1328 = vmatmul.mubr.bf16.gmra.mxu0 %v109_v48  ;;  %2408 = vmatprep.subr.bf16.mxu1 %v2732_v46 }
  0x9f   :  { %2369 = vmatpush3.bf16.msra.mxu0 %v2731_v47  ;;  %1337 = vmatprep.mubr.bf16.mxu0 %v117_v52 }
  0xa0   :  { %1470 = vmatmul.mubr.bf16.gmra.mxu1 %v3249_v50  ;;  %2370 = vmatprep.subr.bf16.mxu0 %v2734_v51  ;;  %v2742_v50 = vld [vmem:[%s3963_s1 + $0x248] ss:$12 sps:$4 sm:$0xff]  }
  0xa1   :  { %2409 = vmatpush3.bf16.msra.mxu1 %v2733_v32  ;;  %1477 = vmatprep.mubr.bf16.mxu1 %v3257_v53  ;;  %v2741_v53 = vld [vmem:[%s3963_s1 + $0x320] ss:$12 sps:$4 sm:$0xff]  }
  0xa2   :  { %2410 = vmatprep.subr.bf16.mxu1 %v2736_v36 }
  0xa3   :  { %2371 = vmatpush3.bf16.msra.mxu0 %v2735_v56 }
  0xa4   :  { %2372 = vmatprep.subr.bf16.mxu0 %v2738_v60 }
  0xa5   :  { %2411 = vmatpush3.bf16.msra.mxu1 %v2737_v62 }
  0xa6   :  { %1338 = vmatmul.mubr.bf16.gmra.mxu0 %v116_v63  ;;  %2412 = vmatprep.subr.bf16.mxu1 %v2740_v1 }
  0xa7   :  { %2373 = vmatpush3.bf16.msra.mxu0 %v2739_v3  ;;  %1518 = vmatprep.mubr.bf16.mxu0 %v3075_v55  ;;  %v2747_v55 = vld [vmem:[#allocation2 + $0x78] sm:$0xff]   ;;  %v317_v3 = vlaneseq }
  0xa8   :  { %1478 = vmatmul.mubr.bf16.gmra.mxu1 %v3288_v0  ;;  %2374 = vmatprep.subr.bf16.mxu0 %v2742_v50  ;;  %v2754_v0 = vld [vmem:[#allocation2 + $0x20] sm:$0xff]  }
  0xa9   :  { %2413 = vmatpush3.bf16.msra.mxu1 %v2741_v53  ;;  %1583 = vmatprep.mubr.bf16.mxu1 %v3325_v13  ;;  %v2756_v13 = vld [vmem:[#allocation2 + $0x18] sm:$0xff]  }
  0xaa   :  { %2414 = vmatprep.subr.bf16.mxu1 %v2744_v4 }
  0xab   :  { %2375 = vmatpush3.bf16.msra.mxu0 %v2743_v5  ;;  %v3716_v5 = vshrl.u32 %v317_v3, 7 }
  0xac   :  { %2497 = vmatprep.subr.bf16.mxu0 %v2746_v6 }
  0xad   :  { %2415 = vmatpush3.bf16.msra.mxu1 %v2745_v7  ;;  %3991 = vst [vmem:[#allocation12_spill] sm:$0xff] %v3716_v5 }
  0xae   :  { %1519 = vmatmul.mubr.bf16.vlgmr.msra.gmra.mxu0 %v3157_v19  ;;  %v2748_v19 = vld [vmem:[#allocation2 + $0x38] sm:$0xff]   ;;  %2445 = vmatprep.subr.bf16.mxu1 %v2747_v55 }
  0xaf   :  { %2498 = vmatpush3.bf16.msra.mxu0 %v2746_v6  ;;  %1526 = vmatprep.mubr.bf16.mxu0 %v3165_v22  ;;  %v2749_v22 = vld [vmem:[#allocation2 + $0x70] sm:$0xff]  }
  0xb0   :  { %1584 = vmatmul.mubr.bf16.vlgmr.msra.gmra.mxu1 %v3468_v10  ;;  %v2762_v10 = vld [vmem:[#allocation2] sm:$0xff]   ;;  %2507 = vmatprep.subr.bf16.mxu0 %v3631_v11 }
  0xb1   :  { %1591 = vmatprep.mubr.bf16.mxu1 %v3479_v16  ;;  %2446 = vmatpush3.bf16.msra.mxu1 %v2748_v19  ;;  %v323_v19 = vsub.s32 1, %v3716_v5 }
  0xb2   :  { %2447 = vmatprep.subr.bf16.mxu1 %v2749_v22 }
  0xb6   :  { %1527 = vmatmul.mubr.bf16.gmra.mxu0 %v3211_v37  ;;  %v2750_v37 = vld [vmem:[#allocation2 + $0x30] sm:$0xff]  }
  0xb7   :  { %1534 = vmatprep.mubr.bf16.mxu0 %v3219_v40  ;;  %2448 = vmatpush3.bf16.msra.mxu1 %v2750_v37  ;;  %v2751_v40 = vld [vmem:[#allocation2 + $0x68] sm:$0xff]  }
  0xb8   :  { %1592 = vmatmul.mubr.bf16.gmra.mxu1 %v3515_v31  ;;  %2449 = vmatprep.subr.bf16.mxu1 %v2751_v40  ;;  %v3732_v40 = vld [vmem:[%s3964_s2] sm:$0x7] }
  0xb9   :  { %1599 = vmatprep.mubr.bf16.mxu1 %v3523_v33  ;;  %v3674_v33 = vld [vmem:[#allocation2 + $0x88] sm:$0xff]   ;;  %3992 = vst [vmem:[#allocation13_spill] sm:$0xff] %v3732_v40 }
  0xba   :  { %3989 = vst [vmem:[#allocation10_spill] sm:$0xff] %v3674_v33 }
  0xbe   :  { %1535 = vmatmul.mubr.bf16.gmra.mxu0 %v3259_v54  ;;  %v2752_v54 = vld [vmem:[#allocation2 + $0x28] sm:$0xff]  }
  0xbf   :  { %1542 = vmatprep.mubr.bf16.mxu0 %v3267_v58  ;;  %2450 = vmatpush3.bf16.msra.mxu1 %v2752_v54  ;;  %v2753_v58 = vld [vmem:[#allocation2 + $0x60] sm:$0xff]   ;;  %v319_v54 = vsub.s32 0, %v3716_v5 }
  0xc0   :  { %1600 = vmatmul.mubr.bf16.gmra.mxu1 %v109_v48  ;;  %2451 = vmatprep.subr.bf16.mxu1 %v2753_v58 }
  0xc1   :  { %1607 = vmatprep.mubr.bf16.mxu1 %v117_v52 }
  0xc3   :  { %2452 = vmatpush3.bf16.msra.mxu1 %v2754_v0  ;;  %v3738_v0 = vrot.slane %v3732_v40, %v323_v19 }
  0xc6   :  { %1543 = vmatmul.mubr.bf16.gmra.mxu0 %v3293_v2  ;;  %v2755_v2 = vld [vmem:[#allocation2 + $0x58] sm:$0xff]  }
  0xc7   :  { %2499 = vmatprep.mubr.msk.bf16.mxu0 %vm1116_vm0, %v3327_v15  ;;  %2453 = vmatprep.subr.bf16.mxu1 %v2755_v2  ;;  %v2757_v15 = vld [vmem:[#allocation2 + $0x50] sm:$0xff]  }
  0xc8   :  { %1608 = vmatmul.mubr.bf16.gmra.mxu1 %v116_v63 }
  0xc9   :  { %2454 = vmatpush3.bf16.msra.mxu1 %v2756_v13 }
  0xca   :  { %2455 = vmatprep.subr.bf16.mxu1 %v2757_v15  ;;  %v3745_v15 = vrot.slane %v3732_v40, %v319_v54 }
  0xce   :  { %2500 = vmatmul.mubr.msk.bf16.vlgmr.msra.gmra.mxu0 %vm1116_vm0, %v3360_v28  ;;  %v2758_v28 = vld [vmem:[#allocation2 + $0x10] sm:$0xff]  }
  0xcf   :  { %2503 = vmatprep.mubr.msk.bf16.mxu0 %vm1116_vm0, %v3395_v43  ;;  %2456 = vmatpush3.bf16.msra.mxu1 %v2758_v28  ;;  %v2759_v43 = vld [vmem:[#allocation2 + $0x48] sm:$0xff]  }
  0xd0   :  { %2457 = vmatprep.subr.bf16.mxu1 %v2759_v43  ;;  %2508 = vmatpush3.bf16.msra.mxu0 %v3631_v11 }
  0xd3   :  { %2458 = vmatpush3.bf16.msra.mxu1 %v2760_v8 }
  0xd4   :  { %2459 = vmatprep.subr.bf16.mxu1 %v2761_v9 }
  0xd6   :  { %2504 = vmatmul.mubr.msk.bf16.gmra.mxu0 %vm1116_vm0, %v3433_v61  ;;  %v3636_v61 = vld [vmem:[#allocation2 + $0xb0] sm:$0xff]  }
  0xd7   :  { %2460 = vmatpush3.bf16.msra.mxu1 %v2762_v10  ;;  %3984 = vst [vmem:[#allocation5_spill] sm:$0xff] %v3636_v61  ;;  %2509 = vmatprep.subr.bf16.mxu0 %v3636_v61 }
  0xd8   :  { %2531 = vmatprep.subr.bf16.mxu1 %v3631_v11  ;;  %2510 = vmatpush3.bf16.msra.mxu0 %v3636_v61 }
  0xd9   :  { %2511 = vmatprep.subr.bf16.mxu0 %v3640_v12 }
  0xdc   :  { %2512 = vmatpush3.bf16.msra.mxu0 %v3640_v12 }
  0xdd   :  { %2513 = vmatprep.subr.bf16.mxu0 %v3650_v20 }
  0xe0   :  { %2514 = vmatpush3.bf16.msra.mxu0 %v3650_v20 }
  0xe1   :  { %2515 = vmatprep.subr.bf16.mxu0 %v3658_v25 }
  0xe4   :  { %2516 = vmatpush3.bf16.msra.mxu0 %v3658_v25 }
  0xe5   :  { %2517 = vmatprep.subr.bf16.mxu0 %v3666_v30 }
  0xe8   :  { %2518 = vmatpush3.bf16.msra.mxu0 %v3666_v30 }
  0xe9   :  { %2519 = vmatprep.subr.bf16.mxu0 %v3674_v33 }
  0xec   :  { %2520 = vmatpush3.bf16.msra.mxu0 %v3674_v33 }
  0xed   :  { %2521 = vmatprep.subr.bf16.mxu0 %v3676_v34 }
  0xf0   :  { %2522 = vmatpush3.bf16.msra.mxu0 %v3676_v34 }
 0x10e   :  { %v3645_v16 = vpop.f32.mrf.mxu0 }
 0x10f   :  { %v1164_v10 = vadd.f32 %v3645_v16, %v3745_v15 }
 0x110   :  { %v3642_v49 = vpop.f32.mrf.mxu1  ;;  %v1165_v23 = vpop.f32.mrf.mxu0 }
 0x111   :  { %v1166_v43 = vadd.f32 %v1165_v23, %v3738_v0  ;;  %v1237_v23 = vadd.f32 %v3642_v49, %v1164_v10 }
 0x112   :  { %v3647_v17 = vpop.f32.mrf.mxu1  ;;  %v1167_v27 = vpop.f32.mrf.mxu0 }
 0x113   :  { %v1168_v3 = vadd.f32 %v1167_v27, %v3745_v15  ;;  %v1239_v54 = vadd.f32 %v3647_v17, %v1166_v43 }
 0x114   :  { %v3652_v21 = vpop.f32.mrf.mxu1  ;;  %v1169_v14 = vpop.f32.mrf.mxu0 }
 0x115   :  { %v1170_v33 = vadd.f32 %v1169_v14, %v3738_v0  ;;  %v1241_v30 = vadd.f32 %v3652_v21, %v1168_v3 }
 0x116   :  { %v3655_v24 = vpop.f32.mrf.mxu1  ;;  %v3678_v35 = vpop.f32.mrf.mxu0 }
 0x117   :  { %v1243_v16 = vadd.f32 %v3655_v24, %v1170_v33  ;;  %v1174_v17 = vadd.f32 %v3678_v35, %v3745_v15 }
 0x118   :  { %v3660_v26 = vpop.f32.mrf.mxu1  ;;  %v1175_v41 = vpop.f32.mrf.mxu0 }
 0x119   :  { %v1176_v27 = vadd.f32 %v1175_v41, %v3738_v0  ;;  %v1247_v35 = vadd.f32 %v3660_v26, %v1174_v17 }
 0x11a   :  { %v3663_v29 = vpop.f32.mrf.mxu1  ;;  %v1177_v45 = vpop.f32.mrf.mxu0 }
 0x11b   :  { %v1178_v49 = vadd.f32 %v1177_v45, %v3745_v15 }
 0x11c   :  { %v3668_v31 = vpop.f32.mrf.mxu1  ;;  %v1179_v48 = vpop.f32.mrf.mxu0 }
 0x11e   :  { %v3671_v18 = vpop.f32.mrf.mxu1  ;;  %v3700_v52 = vpop.f32.mrf.mxu0 }
 0x11f   :  { %v1184_v26 = vadd.f32 %v3700_v52, %v3745_v15 }
 0x120   :  { %v3680_v38 = vpop.f32.mrf.mxu1  ;;  %v3702_v57 = vpop.f32.mrf.mxu0 }
 0x122   :  { %v3683_v39 = vpop.f32.mrf.mxu1  ;;  %v3704_v62 = vpop.f32.mrf.mxu0 }
 0x124   :  { %v3687_v42 = vpop.f32.mrf.mxu1  ;;  %v3710_v50 = vpop.f32.mrf.mxu0 }
 0x126   :  { %v3689_v44 = vpop.f32.mrf.mxu1  ;;  %v3718_v6 = vpop.f32.mrf.mxu0 }
 0x128   :  { %v3692_v46 = vpop.f32.mrf.mxu1  ;;  %v3725_v22 = vpop.f32.mrf.mxu0 }
 0x12a   :  { %v3694_v47 = vpop.f32.mrf.mxu1  ;;  %v3740_v2 = vpop.f32.mrf.mxu0 }
 0x12c   :  { %v3696_v51 = vpop.f32.mrf.mxu1  ;;  %v3750_v8 = vpop.f32.mrf.mxu0 }
 0x12e   :  { %v3698_v32 = vpop.f32.mrf.mxu1 }
 0x130   :  { %v1382_v36 = vpop.f32.mrf.mxu1 }
 0x132   :  { %v1384_v56 = vpop.f32.mrf.mxu1 }
 0x134   :  { %v1386_v59 = vpop.f32.mrf.mxu1 }
 0x136   :  { %v1388_v60 = vpop.f32.mrf.mxu1 }
 0x138   :  { %v3706_v63 = vpop.f32.mrf.mxu1 }
 0x13a   :  { %v3708_v1 = vpop.f32.mrf.mxu1 }
 0x13c   :  { %v3712_v53 = vpop.f32.mrf.mxu1 }
 0x13e   :  { %v3714_v4 = vpop.f32.mrf.mxu1 }
 0x140   :  { %v3720_v7 = vpop.f32.mrf.mxu1 }
 0x142   :  { %v3722_v55 = vpop.f32.mrf.mxu1 }
 0x144   :  { %v3727_v37 = vpop.f32.mrf.mxu1 }
 0x146   :  { %v3735_v58 = vpop.f32.mrf.mxu1 }
 0x148   :  { %v3742_v13 = vpop.f32.mrf.mxu1 }
 0x149   :  { %3993 = vst [vmem:[#allocation14_spill] sm:$0xff] %v3742_v13 }
 0x14a   :  { %v3747_v28 = vpop.f32.mrf.mxu1 }
 0x14c   :  { %v3752_v9 = vpop.f32.mrf.mxu1 }
 0x14e   :  { %v1309_v19 = vpop.f32.mrf.mxu0  ;;  %v3757_v34 = vpop.f32.mrf.mxu1 }
 0x14f   :  { %3994 = vst [vmem:[#allocation15_spill] sm:$0xff] %v3757_v34  ;;  %v1310_v34 = vadd.f32 %v1309_v19, %v1237_v23 }
 0x150   :  { %v1311_v40 = vpop.f32.mrf.mxu0  ;;  %v3761_v5 = vpop.f32.mrf.mxu1 }
 0x151   :  { %v1312_v25 = vadd.f32 %v1311_v40, %v1239_v54  ;;  %v1180_v40 = vadd.f32 %v1179_v48, %v3738_v0  ;;  %v1383_v24 = vadd.f32 %v1382_v36, %v1310_v34 }
 0x152   :  { %v1313_v20 = vpop.f32.mrf.mxu0  ;;  %v3765_v12 = vpop.f32.mrf.mxu1 }
 0x153   :  { %v1314_v13 = vadd.f32 %v1313_v20, %v1241_v30  ;;  %v1385_v10 = vadd.f32 %v1384_v56, %v1312_v25  ;;  %v1249_v20 = vadd.f32 %v3663_v29, %v1176_v27  ;;  %v1186_v25 = vadd.f32 %v3702_v57, %v3738_v0 }
 0x154   :  { %v1315_v14 = vpop.f32.mrf.mxu0  ;;  %v3769_v61 = vpop.f32.mrf.mxu1  ;;  %v1253_v34 = vadd.f32 %v3671_v18, %v1180_v40  ;;  %v1190_v18 = vadd.f32 %v3710_v50, %v3738_v0 }
 0x155   :  { %v1387_v43 = vadd.f32 %v1386_v59, %v1314_v13  ;;  %v1316_v21 = vadd.f32 %v1315_v14, %v1243_v16  ;;  %v1251_v59 = vadd.f32 %v3668_v31, %v1178_v49  ;;  %v1188_v31 = vadd.f32 %v3704_v62, %v3745_v15 }
 0x156   :  { %v1319_v3 = vpop.f32.mrf.mxu0  ;;  %v3775_v54 = vpop.f32.mrf.mxu1  ;;  %v1259_v17 = vadd.f32 %v3683_v39, %v1186_v25  ;;  %v1257_v62 = vadd.f32 %v3680_v38, %v1184_v26 }
 0x157   :  { %v1389_v33 = vadd.f32 %v1388_v60, %v1316_v21  ;;  %2771 = vtanh.f32 %v1387_v43  ;;  %v1320_v29 = vadd.f32 %v1319_v3, %v1247_v35  ;;  %v1261_v50 = vadd.f32 %v3687_v42, %v1188_v31 }
 0x158   :  { %v1321_v30 = vpop.f32.mrf.mxu0  ;;  %v3778_v41 = vpop.f32.mrf.mxu1  ;;  %v1196_v43 = vadd.f32 %v3725_v22, %v3738_v0  ;;  %v1194_v3 = vadd.f32 %v3718_v6, %v3745_v15  ;;  %v1198_v22 = vadd.f32 %v3740_v2, %v3745_v15 }
 0x159   :  { %2773 = vtanh.f32 %v1389_v33  ;;  %v1322_v45 = vadd.f32 %v1321_v30, %v1249_v20 }
 0x15a   :  { %2775 = vtanh.f32 %v1385_v10  ;;  %v1323_v48 = vpop.f32.mrf.mxu0  ;;  %v3784_v56 = vpop.f32.mrf.mxu1  ;;  %v1269_v25 = vadd.f32 %v3694_v47, %v1196_v43  ;;  %v3998_v43 = vld [vmem:[#allocation6_spill] sm:$0xff] }
 0x15b   :  { %2777 = vtanh.f32 %v1383_v24  ;;  %v1395_v36 = vadd.f32 %v3708_v1, %v1322_v45  ;;  %v1324_v60 = vadd.f32 %v1323_v48, %v1251_v59  ;;  %v1393_v1 = vadd.f32 %v3706_v63, %v1320_v29 }
 0x15c   :  { %v1325_v13 = vpop.f32.mrf.mxu0  ;;  %v3788_v19 = vpop.f32.mrf.mxu1 }
 0x15d   :  { %v1397_v57 = vadd.f32 %v3712_v53, %v1324_v60  ;;  %v1326_v23 = vadd.f32 %v1325_v13, %v1253_v34  ;;  %2779 = vtanh.f32 %v1395_v36 }
 0x15e   :  { %v1329_v16 = vpop.f32.mrf.mxu0  ;;  %v3797_v27 = vpop.f32.mrf.mxu1 }
 0x15f   :  { %v1399_v14 = vadd.f32 %v3714_v4, %v1326_v23  ;;  %2781 = vtanh.f32 %v1397_v57  ;;  %v1263_v4 = vadd.f32 %v3689_v44, %v1190_v18  ;;  %v1330_v39 = vadd.f32 %v1329_v16, %v1257_v62  ;;  %v3995_v18 = vld [vmem:[#allocation5_spill] sm:$0xff] }
 0x160   :  { %v1331_v52 = vpop.f32.mrf.mxu0  ;;  %v3802_v49 = vpop.f32.mrf.mxu1  ;;  %v1200_v44 = vadd.f32 %v3750_v8, %v3738_v0  ;;  %v1271_v8 = vadd.f32 %v3696_v51, %v1198_v22 }
 0x161   :  { %2783 = vtanh.f32 %v1399_v14  ;;  %v1332_v53 = vadd.f32 %v1331_v52, %v1259_v17  ;;  %v1403_v6 = vadd.f32 %v3720_v7, %v1330_v39  ;;  %v3997_v17 = vld [vmem:[#allocation15_spill] sm:$0xff] }
 0x162   :  { %v1333_v21 = vpop.f32.mrf.mxu0  ;;  %v3808_v63 = vpop.f32.mrf.mxu1  ;;  %2785 = vtanh.f32 %v1393_v1 }
 0x163   :  { %v1405_v40 = vadd.f32 %v3722_v55, %v1332_v53  ;;  %v1334_v10 = vadd.f32 %v1333_v21, %v1261_v50 }
 0x164   :  { %v1335_v38 = vpop.f32.mrf.mxu0  ;;  %v3814_v24 = vpop.f32.mrf.mxu1 }
 0x165   :  { %v2772_v42 = vpop.eup %2771  ;;  %v1407_v33 = vadd.f32 %v3727_v37, %v1334_v10  ;;  %v1336_v20 = vadd.f32 %v1335_v38, %v1263_v4  ;;  %2787 = vtanh.f32 %v1405_v40  ;;  %v1267_v37 = vadd.f32 %v3692_v46, %v1194_v3  ;;  %v3999_v38 = vld [vmem:[#allocation7_spill] sm:$0xff] }
 0x166   :  { %v2774_v30 = vpop.eup %2773  ;;  %v1339_v35 = vpop.f32.mrf.mxu0 }
 0x167   :  { %v3821_v55 = vpop.f32.mrf.mxu1  ;;  %v2776_v45 = vpop.eup %2775  ;;  %v1409_v59 = vadd.f32 %v3735_v58, %v1336_v20  ;;  %2789 = vtanh.f32 %v1407_v33  ;;  %v1273_v58 = vadd.f32 %v3698_v32, %v1200_v44  ;;  %v1340_v47 = vadd.f32 %v1339_v35, %v1267_v37 }
 0x168   :  { %v2778_v48 = vpop.eup %2777  ;;  %v1341_v2 = vpop.f32.mrf.mxu0  ;;  %v1706_v34 = vpack.c.bf16 %v2774_v30, %v2776_v45 }
 0x169   :  { %v3827_v15 = vpop.f32.mrf.mxu1  ;;  %2791 = vtanh.f32 %v1409_v59  ;;  %v1342_v0 = vadd.f32 %v1341_v2, %v1269_v25  ;;  %v1705_v29 = vpack.c.bf16 %v2772_v42, %v2778_v48 }
 0x16a   :  { %1948 = vmatprep.mubr.bf16.mxu1 %v1706_v34  ;;  %v1343_v7 = vpop.f32.mrf.mxu0  ;;  %2793 = vtanh.f32 %v1403_v6  ;;  %v2780_v13 = vpop.eup %2779  ;;  %v4000_v6 = vld [vmem:[#allocation8_spill] sm:$0xff] }
 0x16b   :  { %v3830_v36 = vpop.f32.mrf.mxu1  ;;  %v1415_v60 = vadd.f32 %v3747_v28, %v1342_v0  ;;  %v1344_v46 = vadd.f32 %v1343_v7, %v1271_v8  ;;  %1949 = vmatmul.mubr.bf16.vlgmr.msra.gmra.mxu1 %v1705_v29  ;;  %v3996_v28 = vld [vmem:[#allocation14_spill] sm:$0xff]  ;;  %v4001_v0 = vld [vmem:[#allocation9_spill] sm:$0xff] }
 0x16c   :  { %v1345_v26 = vpop.f32.mrf.mxu0  ;;  %2539 = vmatpush3.bf16.msra.mxu1 %v3631_v11  ;;  %v2782_v51 = vpop.eup %2781  ;;  %v1413_v14 = vadd.f32 %v3996_v28, %v1340_v47 }
 0x16d   :  { %v3834_v31 = vpop.f32.mrf.mxu1  ;;  %v1417_v57 = vadd.f32 %v3752_v9, %v1344_v46  ;;  %v1346_v23 = vadd.f32 %v1345_v26, %v1273_v58  ;;  %2532 = vmatprep.subr.bf16.mxu1 %v3995_v18  ;;  %2795 = vtanh.f32 %v1415_v60 }
 0x16e   :  { %v2784_v16 = vpop.eup %2783  ;;  %v3841_v1 = vpop.f32.mrf.mxu0 }
 0x16f   :  { %v3839_v32 = vpop.f32.mrf.mxu1  ;;  %v1419_v52 = vadd.f32 %v3997_v17, %v1346_v23  ;;  %v1709_v62 = vpack.c.bf16 %v2784_v16, %v2780_v13  ;;  %v2786_v53 = vpop.eup %2785  ;;  %2797 = vtanh.f32 %v1417_v57  ;;  %v4002_v13 = vld [vmem:[#allocation12_spill] sm:$0xff]  ;;  %v4003_v57 = vld [vmem:[#allocation10_spill] sm:$0xff] }
 0x170   :  { %v2377_v11 = vpop.f32.mrf.mxu0  ;;  %2540 = vmatpush3.bf16.msra.mxu1 %v3995_v18  ;;  %v1708_v9 = vpack.c.bf16 %v2782_v51, %v2786_v53  ;;  %v327_v26 = vsub.s32 2, %v4002_v13 }
 0x171   :  { %v3845_v50 = vpop.f32.mrf.mxu1  ;;  %2799 = vtanh.f32 %v1419_v52  ;;  %1956 = vmatprep.mubr.bf16.mxu1 %v1709_v62  ;;  %2533 = vmatprep.subr.bf16.mxu1 %v3998_v43  ;;  %v2338_v52 = vadd.f32 %v3765_v12, %v3761_v5  ;;  %v4005_v62 = vld [vmem:[#allocation11_spill] sm:$0xff] }
 0x172   :  { %v2379_v21 = vpop.f32.mrf.mxu0  ;;  %2801 = vtanh.f32 %v1413_v14  ;;  %v2788_v39 = vpop.eup %2787  ;;  %v4004_v14 = vld [vmem:[#allocation13_spill] sm:$0xff] }
 0x173   :  { %v3849_v4 = vpop.f32.mrf.mxu1  ;;  %1957 = vmatmul.mubr.bf16.gmra.mxu1 %v1708_v9  ;;  %v328_v17 = vrot.slane %v4004_v14, %v327_v26 }
 0x174   :  { %v2380_v40 = vpop.f32.mrf.mxu0  ;;  %2541 = vmatpush3.bf16.msra.mxu1 %v3998_v43  ;;  %v2790_v3 = vpop.eup %2789  ;;  %v2347_v43 = vadd.f32 %v3797_v27, %v3788_v19  ;;  %v2418_v27 = vadd.f32 %v3849_v4, %v3845_v50 }
 0x175   :  { %v3851_v10 = vpop.f32.mrf.mxu1  ;;  %2534 = vmatprep.subr.bf16.mxu1 %v3999_v38  ;;  %v1456_v12 = vadd.f32 %v2338_v52, %v328_v17 }
 0x176   :  { %v2792_v42 = vpop.eup %2791  ;;  %v2382_v22 = vpop.f32.mrf.mxu0 }
 0x177   :  { %v3855_v33 = vpop.f32.mrf.mxu1  ;;  %v1712_v20 = vpack.c.bf16 %v2792_v42, %v2788_v39  ;;  %v2794_v30 = vpop.eup %2793  ;;  %v2378_v39 = vadd.f32 %v2377_v11, %v3841_v1 }
 0x178   :  { %v2383_v44 = vpop.f32.mrf.mxu0  ;;  %2542 = vmatpush3.bf16.msra.mxu1 %v3999_v38  ;;  %v1711_v45 = vpack.c.bf16 %v2790_v3, %v2794_v30  ;;  %v2341_v3 = vadd.f32 %v3775_v54, %v3769_v61  ;;  %v2344_v38 = vadd.f32 %v3784_v56, %v3778_v41  ;;  %v2381_v30 = vadd.f32 %v2380_v40, %v2379_v21 }
 0x179   :  { %v3857_v35 = vpop.f32.mrf.mxu1  ;;  %1964 = vmatprep.mubr.bf16.mxu1 %v1712_v20  ;;  %2535 = vmatprep.subr.bf16.mxu1 %v4000_v6  ;;  %v1521_v19 = vadd.f32 %v2378_v39, %v1456_v12  ;;  %v2350_v41 = vadd.f32 %v3808_v63, %v3802_v49  ;;  %v2359_v56 = vadd.f32 %v3839_v32, %v3834_v31 }
 0x17a   :  { %v2385_v59 = vpop.f32.mrf.mxu0  ;;  %v2796_v48 = vpop.eup %2795  ;;  %v1459_v1 = vadd.f32 %v2341_v3, %v328_v17  ;;  %v1464_v61 = vadd.f32 %v2344_v38, %v328_v17  ;;  %v2421_v40 = vadd.f32 %v3855_v33, %v3851_v10  ;;  %v2356_v49 = vadd.f32 %v3830_v36, %v3827_v15 }
 0x17b   :  { %v2423_v25 = vpop.f32.mrf.mxu1  ;;  %1965 = vmatmul.mubr.bf16.gmra.mxu1 %v1711_v45  ;;  %v2384_v45 = vadd.f32 %v2383_v44, %v2382_v22  ;;  %v1472_v31 = vadd.f32 %v2350_v41, %v328_v17 }
 0x17c   :  { %v2386_v37 = vpop.f32.mrf.mxu0  ;;  %2543 = vmatpush3.bf16.msra.mxu1 %v4000_v6  ;;  %v2798_v34 = vpop.eup %2797  ;;  %v1524_v21 = vadd.f32 %v2381_v30, %v1459_v1  ;;  %v2424_v44 = vadd.f32 %v2423_v25, %v3857_v35 }
 0x17d   :  { %v2425_v2 = vpop.f32.mrf.mxu1  ;;  %2536 = vmatprep.subr.bf16.mxu1 %v4001_v0  ;;  %v2387_v5 = vadd.f32 %v2386_v37, %v2385_v59  ;;  %v1529_v22 = vadd.f32 %v2384_v45, %v1464_v61 }
 0x17e   :  { %v2800_v8 = vpop.eup %2799  ;;  %v2388_v29 = vpop.f32.mrf.mxu0  ;;  %v1589_v25 = vadd.f32 %v2421_v40, %v1524_v21 }
 0x17f   :  { %v2426_v7 = vpop.f32.mrf.mxu1  ;;  %v1715_v58 = vpack.c.bf16 %v2800_v8, %v2796_v48  ;;  %v2802_v47 = vpop.eup %2801  ;;  %v2353_v8 = vadd.f32 %v3821_v55, %v3814_v24  ;;  %v1480_v24 = vadd.f32 %v2356_v49, %v328_v17 }
 0x180   :  { %v2389_v60 = vpop.f32.mrf.mxu0  ;;  %2544 = vmatpush3.bf16.msra.mxu1 %v4001_v0  ;;  %v1714_v51 = vpack.c.bf16 %v2798_v34, %v2802_v47  ;;  %v1467_v34 = vadd.f32 %v2347_v43, %v328_v17  ;;  %v2427_v59 = vadd.f32 %v2426_v7, %v2425_v2  ;;  %v1586_v0 = vadd.f32 %v2418_v27, %v1521_v19 }
 0x181   :  { %v2428_v46 = vpop.f32.mrf.mxu1  ;;  %1972 = vmatprep.mubr.bf16.mxu1 %v1715_v58  ;;  %2537 = vmatprep.subr.bf16.mxu1 %v4003_v57  ;;  %v2390_v4 = vadd.f32 %v2389_v60, %v2388_v29  ;;  %v1483_v58 = vadd.f32 %v2359_v56, %v328_v17  ;;  %v1594_v47 = vadd.f32 %v2424_v44, %v1529_v22 }
 0x182   :  { %v2391_v23 = vpop.f32.mrf.mxu0  ;;  %v1532_v11 = vadd.f32 %v2387_v5, %v1467_v34 }
 0x183   :  { %v2429_v18 = vpop.f32.mrf.mxu1  ;;  %1973 = vmatmul.mubr.bf16.gmra.mxu1 %v1714_v51  ;;  %v1537_v13 = vadd.f32 %v2390_v4, %v1472_v31  ;;  %v1475_v51 = vadd.f32 %v2353_v8, %v328_v17 }
 0x184   :  { %v2392_v16 = vpop.f32.mrf.mxu0  ;;  %2545 = vmatpush3.bf16.msra.mxu1 %v4003_v57  ;;  %v1597_v7 = vadd.f32 %v2427_v59, %v1532_v11  ;;  %v2430_v29 = vadd.f32 %v2429_v18, %v2428_v46 }
 0x185   :  { %v3866_v28 = vpop.f32.mrf.mxu1  ;;  %2538 = vmatprep.subr.bf16.mxu1 %v4005_v62  ;;  %v2393_v60 = vadd.f32 %v2392_v16, %v2391_v23 }
 0x186   :  { %v2394_v53 = vpop.f32.mrf.mxu0  ;;  %v1602_v3 = vadd.f32 %v2430_v29, %v1537_v13 }
 0x187   :  { %v2432_v9 = vpop.f32.mrf.mxu1  ;;  %v1540_v43 = vadd.f32 %v2393_v60, %v1475_v51 }
 0x188   :  { %v2395_v42 = vpop.f32.mrf.mxu0  ;;  %2546 = vmatpush3.bf16.msra.mxu1 %v4005_v62  ;;  %v2433_v39 = vadd.f32 %v2432_v9, %v3866_v28 }
 0x189   :  { %v2434_v20 = vpop.f32.mrf.mxu1  ;;  %v2396_v10 = vadd.f32 %v2395_v42, %v2394_v53 }
 0x18a   :  { %v2397_v6 = vpop.f32.mrf.mxu0  ;;  %v1605_v42 = vadd.f32 %v2433_v39, %v1540_v43 }
 0x18b   :  { %v2435_v48 = vpop.f32.mrf.mxu1  ;;  %v1545_v52 = vadd.f32 %v2396_v10, %v1480_v24 }
 0x18c   :  { %v2398_v54 = vpop.f32.mrf.mxu0  ;;  %v2436_v62 = vadd.f32 %v2435_v48, %v2434_v20 }
 0x18d   :  { %v2437_v37 = vpop.f32.mrf.mxu1  ;;  %v2399_v32 = vadd.f32 %v2398_v54, %v2397_v6 }
 0x18e   :  { %v2501_v50 = vpop.f32.mrf.mxu0  ;;  %v1610_v16 = vadd.f32 %v2436_v62, %v1545_v52 }
 0x18f   :  { %v2438_v33 = vpop.f32.mrf.mxu1  ;;  %v1659_v55 = vadd.f32 %v2501_v50, %v1594_v47  ;;  %v1548_v15 = vadd.f32 %v2399_v32, %v1483_v58  ;;  %v2295_v32 = vld [vmem:[%s3966_s4] ss:$0 sm:$0xff] }
 0x190   :  { %v1650_v63 = vpop.f32.mrf.mxu0  ;;  %v2439_v36 = vadd.f32 %v2438_v33, %v2437_v37 }
 0x191   :  { %v1651_v2 = vadd.f32 %v1650_v63, %v1586_v0 }
 0x192   :  { %v2502_v35 = vpop.f32.mrf.mxu0  ;;  %v1613_v18 = vadd.f32 %v2439_v36, %v1548_v15 }
 0x193   :  { %v1662_v26 = vadd.f32 %v2502_v35, %v1597_v7  ;;  %2803 = vtanh.f32 %v1651_v2 }
 0x194   :  { %v1653_v57 = vpop.f32.mrf.mxu0 }
 0x195   :  { %v1654_v14 = vadd.f32 %v1653_v57, %v1589_v25  ;;  %2805 = vtanh.f32 %v1662_v26 }
 0x196   :  { %v2505_v53 = vpop.f32.mrf.mxu0 }
 0x197   :  { %2807 = vtanh.f32 %v1654_v14  ;;  %v1675_v12 = vadd.f32 %v2505_v53, %v1610_v16 }
 0x198   :  { %2809 = vtanh.f32 %v1659_v55  ;;  %v1666_v46 = vpop.f32.mrf.mxu0 }
 0x199   :  { %v1667_v23 = vadd.f32 %v1666_v46, %v1602_v3 }
 0x19a   :  { %v2506_v17 = vpop.f32.mrf.mxu0 }
 0x19b   :  { %v1678_v38 = vadd.f32 %v2506_v17, %v1613_v18  ;;  %2811 = vtanh.f32 %v1667_v23 }
 0x19c   :  { %v1669_v5 = vpop.f32.mrf.mxu0 }
 0x19d   :  { %v1670_v30 = vadd.f32 %v1669_v5, %v1605_v42  ;;  %2813 = vtanh.f32 %v1678_v38 }
 0x19f   :  { %2815 = vtanh.f32 %v1670_v30 }
 0x1a0   :  { %2817 = vtanh.f32 %v1675_v12  ;;  %v2804_v20 = vpop.eup %2803 }
 0x1a2   :  { %v2806_v45 = vpop.eup %2805 }
 0x1a4   :  { %v2808_v28 = vpop.eup %2807 }
 0x1a5   :  { %v2810_v9 = vpop.eup %2809  ;;  %v1707_v6 = vpack.c.bf16 %v2808_v28, %v2804_v20 }
 0x1a6   :  { %v1710_v48 = vpack.c.bf16 %v2806_v45, %v2810_v9 }
 0x1a7   :  { %2523 = vmatprep.mubr.bf16.mxu0 %v1707_v6 }
 0x1a8   :  { %2524 = vmatmul.mubr.bf16.vlgmr.msra.gmra.mxu0 %v1710_v48  ;;  %v2812_v34 = vpop.eup %2811 }
 0x1aa   :  { %v2814_v19 = vpop.eup %2813 }
 0x1ac   :  { %v2816_v27 = vpop.eup %2815 }
 0x1ad   :  { %v2818_v1 = vpop.eup %2817  ;;  %v1713_v61 = vpack.c.bf16 %v2816_v27, %v2812_v34 }
 0x1ae   :  { %v1716_v54 = vpack.c.bf16 %v2814_v19, %v2818_v1 }
 0x1af   :  { %2527 = vmatprep.mubr.bf16.mxu1 %v1713_v61 }
 0x1b0   :  { %2528 = vmatmul.mubr.bf16.vlgmr.msra.gmra.mxu1 %v1716_v54 }
 0x22b   :  { %v2461_v41 = vpop.f32.mrf.mxu1 }
 0x22d   :  { %v2462_v56 = vpop.f32.mrf.mxu1 }
 0x22e   :  { %v2463_v63 = vadd.f32 %v2462_v56, %v2461_v41 }
 0x22f   :  { %v2464_v11 = vpop.f32.mrf.mxu1 }
 0x230   :  { %v1951_v47 = vadd.f32 %v2463_v63, %v2295_v32 }
 0x231   :  { %v2465_v59 = vpop.f32.mrf.mxu1 }
 0x232   :  { %v2466_v10 = vadd.f32 %v2465_v59, %v2464_v11 }
 0x233   :  { %v2467_v21 = vpop.f32.mrf.mxu1 }
 0x234   :  { %v1954_v24 = vadd.f32 %v2466_v10, %v2295_v32 }
 0x235   :  { %v2468_v40 = vpop.f32.mrf.mxu1 }
 0x236   :  { %v2469_v49 = vadd.f32 %v2468_v40, %v2467_v21 }
 0x237   :  { %v2470_v22 = vpop.f32.mrf.mxu1 }
 0x238   :  { %v1959_v7 = vadd.f32 %v2469_v49, %v2295_v32 }
 0x239   :  { %v2471_v44 = vpop.f32.mrf.mxu1 }
 0x23a   :  { %v2472_v2 = vadd.f32 %v2471_v44, %v2470_v22 }
 0x23b   :  { %v2473_v37 = vpop.f32.mrf.mxu1 }
 0x23c   :  { %v1962_v29 = vadd.f32 %v2472_v2, %v2295_v32 }
 0x23d   :  { %v2474_v50 = vpop.f32.mrf.mxu1 }
 0x23e   :  { %v2475_v26 = vadd.f32 %v2474_v50, %v2473_v37 }
 0x23f   :  { %v2476_v4 = vpop.f32.mrf.mxu1 }
 0x240   :  { %v1967_v62 = vadd.f32 %v2475_v26, %v2295_v32 }
 0x241   :  { %v2477_v0 = vpop.f32.mrf.mxu1 }
 0x242   :  { %v2478_v14 = vadd.f32 %v2477_v0, %v2476_v4 }
 0x243   :  { %v2479_v8 = vpop.f32.mrf.mxu1 }
 0x244   :  { %v1970_v23 = vadd.f32 %v2478_v14, %v2295_v32 }
 0x245   :  { %v2480_v31 = vpop.f32.mrf.mxu1 }
 0x246   :  { %v2481_v52 = vadd.f32 %v2480_v31, %v2479_v8 }
 0x247   :  { %v2482_v35 = vpop.f32.mrf.mxu1 }
 0x248   :  { %v1975_v46 = vadd.f32 %v2481_v52, %v2295_v32 }
 0x249   :  { %v2483_v55 = vpop.f32.mrf.mxu1 }
 0x24a   :  { %v2484_v3 = vadd.f32 %v2483_v55, %v2482_v35 }
 0x24c   :  { %v1978_v38 = vadd.f32 %v2484_v3, %v2295_v32 }
 0x268   :  { %v2525_v58 = vpop.f32.mrf.mxu0 }
 0x269   :  { %v2024_v33 = vadd.f32 %v2525_v58, %v1959_v7 }
 0x26a   :  { %v2015_v25 = vpop.f32.mrf.mxu0 }
 0x26b   :  { %v2016_v13 = vadd.f32 %v2015_v25, %v1951_v47  ;;  %2050 = vmax.xlane.f32.xlu1 %v2024_v33 }
 0x26c   :  { %v2526_v60 = vpop.f32.mrf.mxu0 }
 0x26d   :  { %v2027_v51 = vadd.f32 %v2526_v60, %v1962_v29  ;;  %2046 = vmax.xlane.f32.xlu0 %v2016_v13 }
 0x26e   :  { %v2018_v57 = vpop.f32.mrf.mxu0 }
 0x26f   :  { %v2019_v15 = vadd.f32 %v2018_v57, %v1954_v24  ;;  %2052 = vmax.xlane.f32.xlu1 %v2027_v51 }
 0x270   :  { %v2529_v36 = vpop.f32.mrf.mxu1 }
 0x271   :  { %2048 = vmax.xlane.f32.xlu0 %v2019_v15  ;;  %v2040_v16 = vadd.f32 %v2529_v36, %v1975_v46 }
 0x272   :  { %v2031_v53 = vpop.f32.mrf.mxu1 }
 0x273   :  { %v2032_v43 = vadd.f32 %v2031_v53, %v1967_v62 }
 0x274   :  { %v2530_v39 = vpop.f32.mrf.mxu1 }
 0x275   :  { %2054 = vmax.xlane.f32.xlu0 %v2032_v43  ;;  %v2043_v42 = vadd.f32 %v2530_v39, %v1978_v38 }
 0x276   :  { %v2034_v18 = vpop.f32.mrf.mxu1 }
 0x277   :  { %v2035_v17 = vadd.f32 %v2034_v18, %v1970_v23 }
 0x279   :  { %2056 = vmax.xlane.f32.xlu1 %v2035_v17  ;;  %2058 = vmax.xlane.f32.xlu0 %v2040_v16 }
 0x27d   :  { %2060 = vmax.xlane.f32.xlu1 %v2043_v42 }
 0x2f4   :  { %v2051_v12 = vpop.xlane.xlu1 %2050 }
 0x2f5   :  { %v3898_v5 = vsub.f32 %v2024_v33, %v2051_v12 }
 0x2f6   :  { %v2047_v30 = vpop.xlane.xlu0 %2046 }
 0x2f7   :  { %v2074_v20 = vmul.f32 1.442695, %v3898_v5  ;;  %v3901_v45 = vsub.f32 %v2016_v13, %v2047_v30 }
 0x2f8   :  { %v2053_v28 = vpop.xlane.xlu1 %2052 }
 0x2f9   :  { %2819 = vpow2.f32 %v2074_v20  ;;  %v2070_v9 = vmul.f32 1.442695, %v3901_v45  ;;  %v3904_v6 = vsub.f32 %v2027_v51, %v2053_v28 }
 0x2fa   :  { %v2049_v48 = vpop.xlane.xlu0 %2048 }
 0x2fb   :  { %v2076_v34 = vmul.f32 1.442695, %v3904_v6  ;;  %v3907_v19 = vsub.f32 %v2019_v15, %v2049_v48  ;;  %2821 = vpow2.f32 %v2070_v9 }
 0x2fd   :  { %2823 = vpow2.f32 %v2076_v34  ;;  %v2072_v27 = vmul.f32 1.442695, %v3907_v19 }
 0x2fe   :  { %v2055_v1 = vpop.xlane.xlu0 %2054 }
 0x2ff   :  { %v3910_v61 = vsub.f32 %v2032_v43, %v2055_v1  ;;  %2825 = vpow2.f32 %v2072_v27 }
 0x301   :  { %v2078_v54 = vmul.f32 1.442695, %v3910_v61 }
 0x302   :  { %v2057_v41 = vpop.xlane.xlu1 %2056  ;;  %v2059_v56 = vpop.xlane.xlu0 %2058 }
 0x303   :  { %2827 = vpow2.f32 %v2078_v54  ;;  %v3913_v11 = vsub.f32 %v2035_v17, %v2057_v41  ;;  %v3915_v59 = vsub.f32 %v2040_v16, %v2059_v56 }
 0x305   :  { %v2080_v21 = vmul.f32 1.442695, %v3913_v11  ;;  %v2082_v40 = vmul.f32 1.442695, %v3915_v59 }
 0x306   :  { %v2820_v22 = vpop.eup %2819  ;;  %v2061_v44 = vpop.xlane.xlu1 %2060 }
 0x307   :  { %2829 = vpow2.f32 %v2080_v21  ;;  %v3919_v37 = vsub.f32 %v2043_v42, %v2061_v44  ;;  %2090 = vadd.xlane.f32.xlu0 %v2820_v22 }
 0x308   :  { %2831 = vpow2.f32 %v2082_v40  ;;  %v2822_v50 = vpop.eup %2821 }
 0x309   :  { %v2084_v4 = vmul.f32 1.442695, %v3919_v37 }
 0x30a   :  { %v2824_v0 = vpop.eup %2823 }
 0x30b   :  { %2833 = vpow2.f32 %v2084_v4  ;;  %2092 = vadd.xlane.f32.xlu1 %v2824_v0  ;;  %2086 = vadd.xlane.f32.xlu0 %v2822_v50 }
 0x30c   :  { %v2826_v8 = vpop.eup %2825 }
 0x30f   :  { %2088 = vadd.xlane.f32.xlu1 %v2826_v8 }
 0x310   :  { %v2828_v49 = vpop.eup %2827 }
 0x311   :  { %2094 = vadd.xlane.f32.xlu0 %v2828_v49 }
 0x314   :  { %v2830_v63 = vpop.eup %2829 }
 0x315   :  { %v2832_v31 = vpop.eup %2831  ;;  %2096 = vadd.xlane.f32.xlu1 %v2830_v63 }
 0x316   :  { %2098 = vadd.xlane.f32.xlu0 %v2832_v31 }
 0x318   :  { %v2834_v32 = vpop.eup %2833 }
 0x319   :  { %2100 = vadd.xlane.f32.xlu1 %v2834_v32 }
 0x390   :  { %v2091_v2 = vpop.xlane.xlu0 %2090 }
 0x391   :  { %2835 = vlog2.f32 %v2091_v2 }
 0x394   :  { %v2093_v7 = vpop.xlane.xlu1 %2092  ;;  %v2087_v58 = vpop.xlane.xlu0 %2086 }
 0x395   :  { %2837 = vlog2.f32 %v2093_v7 }
 0x396   :  { %2839 = vlog2.f32 %v2087_v58 }
 0x398   :  { %v2089_v10 = vpop.xlane.xlu1 %2088 }
 0x399   :  { %2841 = vlog2.f32 %v2089_v10 }
 0x39a   :  { %v2095_v33 = vpop.xlane.xlu0 %2094 }
 0x39b   :  { %2843 = vlog2.f32 %v2095_v33 }
 0x39e   :  { %v2836_v47 = vpop.eup %2835  ;;  %v2097_v35 = vpop.xlane.xlu1 %2096 }
 0x39f   :  { %v2107_v25 = vmul.f32 0.6931472, %v2836_v47  ;;  %2845 = vlog2.f32 %v2097_v35  ;;  %v2099_v13 = vpop.xlane.xlu0 %2098 }
 0x3a0   :  { %2847 = vlog2.f32 %v2099_v13 }
 0x3a1   :  { %v2120_v29 = vsub.f32 %v3898_v5, %v2107_v25 }
 0x3a2   :  { %v2838_v60 = vpop.eup %2837  ;;  %v2101_v26 = vpop.xlane.xlu1 %2100 }
 0x3a3   :  { %v2840_v51 = vpop.eup %2839  ;;  %2129 = vst.msk [vmem:[%s3967_s5 + $0x10] sm:$0xff] %vm2126_vm1, %v2120_v29  ;;  %v2109_v24 = vmul.f32 0.6931472, %v2838_v60  ;;  %2849 = vlog2.f32 %v2101_v26 }
 0x3a4   :  { %v2103_v55 = vmul.f32 0.6931472, %v2840_v51 }
 0x3a5   :  { %v2121_v57 = vsub.f32 %v3904_v6, %v2109_v24 }
 0x3a6   :  { %v2842_v15 = vpop.eup %2841  ;;  %v2118_v36 = vsub.f32 %v3901_v45, %v2103_v55 }
 0x3a7   :  { %2130 = vst.msk [vmem:[%s3967_s5 + $0x18] sm:$0xff] %vm2126_vm1, %v2121_v57  ;;  %v2105_v14 = vmul.f32 0.6931472, %v2842_v15 }
 0x3a8   :  { %v2844_v52 = vpop.eup %2843  ;;  %2127 = vst.msk [vmem:[%s3967_s5] sm:$0xff] %vm2126_vm1, %v2118_v36 }
 0x3a9   :  { %v2119_v62 = vsub.f32 %v3907_v19, %v2105_v14  ;;  %v2111_v53 = vmul.f32 0.6931472, %v2844_v52 }
 0x3ab   :  { %2128 = vst.msk [vmem:[%s3967_s5 + $0x8] sm:$0xff] %vm2126_vm1, %v2119_v62  ;;  %v2122_v43 = vsub.f32 %v3910_v61, %v2111_v53 }
 0x3ac   :  { %v2846_v39 = vpop.eup %2845 }
 0x3ad   :  { %v2848_v3 = vpop.eup %2847  ;;  %2131 = vst.msk [vmem:[%s3967_s5 + $0x20] sm:$0xff] %vm2126_vm1, %v2122_v43  ;;  %v2113_v46 = vmul.f32 0.6931472, %v2846_v39 }
 0x3ae   :  { %v2115_v23 = vmul.f32 0.6931472, %v2848_v3 }
 0x3af   :  { %v2123_v18 = vsub.f32 %v3913_v11, %v2113_v46 }
 0x3b0   :  { %v2850_v16 = vpop.eup %2849  ;;  %v2124_v17 = vsub.f32 %v3915_v59, %v2115_v23 }
 0x3b1   :  { %2132 = vst.msk [vmem:[%s3967_s5 + $0x28] sm:$0xff] %vm2126_vm1, %v2123_v18  ;;  %v2117_v38 = vmul.f32 0.6931472, %v2850_v16 }
 0x3b2   :  { %2133 = vst.msk [vmem:[%s3967_s5 + $0x30] sm:$0xff] %vm2126_vm1, %v2124_v17 }
 0x3b3   :  { %v2125_v42 = vsub.f32 %v3919_v37, %v2117_v38 }
 0x3b5   :  { %2134 = vst.msk [vmem:[%s3967_s5 + $0x38] sm:$0xff] %vm2126_vm1, %v2125_v42 }
 0x3b6   :  { %2139 = vsyncpa [#allocation3], 1 }

</bundles_post_ra>
